<compile_context>
chip_gen: v7x
topology: tpu7x:2x2x1
jax: 0.10.0
libtpu: 0.0.40
codegen_flags: <defaults>
</compile_context>

<pallas_src>
import jax
import jax.numpy as jnp
from jax.experimental import pallas as pl
from jax.experimental.pallas import tpu as pltpu

LANE_PAD = 128            # classifier output lanes padded to a full vreg lane width
MAX_ROWS_PER_STEP = 256   # target G*N per grid step (fills a v6e/v7x 256-wide MXU pass)


def _sgcn_kernel(adj_ref, x_ref, w1_ref, b1_ref, w2_ref, b2_ref, wc_ref, bc_ref,
                 out_ref):
    G, N, _ = adj_ref.shape
    GN = G * N
    F_in = x_ref.shape[-1]
    H1 = w1_ref.shape[-1]
    H3 = w2_ref.shape[-1]

    adj = adj_ref[...]                                   # (G, N, N) bf16, A[dst, src]

    # ---- EdgeWeightNorm(norm='right'): per-destination row normalization ----
    wsum = jnp.sum(adj.astype(jnp.float32), axis=-1, keepdims=True)        # (G, N, 1)
    inv_w = pl.reciprocal(jnp.where(wsum > 0.0, wsum, 1.0), approx=True)
    a_norm = adj * inv_w.astype(jnp.bfloat16)            # (G, N, N) bf16 (no f32 blowup)

    # unweighted in-degree (edge weights strictly > 0 where an edge exists)
    deg = jnp.sum((adj > 0).astype(jnp.float32), axis=-1, keepdims=True)   # (G, N, 1)
    inv_deg1 = pl.reciprocal(deg + 1.0, approx=True)     # 1/(deg+1), f32
    # NOTE: for large N these two lane reductions could be fused / moved to the MXU
    # (adj @ ones column); at N=16 they are negligible.

    x = x_ref[...]                                       # (G, N, F_in) bf16

    # ---- SAGEConv layer 1 ('gcn' aggregator) ----
    neigh1 = jnp.einsum('gij,gjf->gif', a_norm, x,
                        preferred_element_type=jnp.float32)                # (G, N, F_in)
    h1 = (neigh1 + x.astype(jnp.float32)) * inv_deg1
    # flatten node dims -> one big (GN, F_in) @ (F_in, H1) MXU matmul (M = G*N)
    h1 = jnp.dot(h1.reshape(GN, F_in).astype(jnp.bfloat16), w1_ref[...],
                 preferred_element_type=jnp.float32) + b1_ref[...]         # (GN, H1)
    h1 = jnp.maximum(h1, 0.0)                                              # relu

    # ---- SAGEConv layer 2 ('gcn' aggregator) ----
    h1_3d = h1.reshape(G, N, H1)
    neigh2 = jnp.einsum('gij,gjf->gif', a_norm, h1_3d.astype(jnp.bfloat16),
                        preferred_element_type=jnp.float32)                # (G, N, H1)
    h2 = (neigh2 + h1_3d) * inv_deg1
    h2 = jnp.dot(h2.reshape(GN, H1).astype(jnp.bfloat16), w2_ref[...],
                 preferred_element_type=jnp.float32) + b2_ref[...]         # (GN, H3)
    h2 = jnp.maximum(h2, 0.0)                                              # relu

    # ---- dgl.mean_nodes (every graph has exactly N real nodes -> /N exact, f32) ----
    hg = jnp.mean(h2.reshape(G, N, H3), axis=1)                            # (G, H3)

    # ---- classifier: lane-dense (G, 128) slab, wc/bc zero-padded to 128 lanes ----
    out_ref[...] = (jnp.dot(hg.astype(jnp.bfloat16), wc_ref[...],
                            preferred_element_type=jnp.float32)
                    + bc_ref[...])                                         # (G, 128)


def sgcn_forward(adj, x, params, num_classes):
    """Batched SGCN forward.

    adj: (B, N, N) A[dst, src], weighted (0 where no edge, strictly > 0 on edges)
    x:   (B, N, F_in) node features
    """
    w1, b1, w2, b2, wc_pad, bc_pad = params
    B, N, _ = adj.shape
    F_in = x.shape[-1]
    H1 = w1.shape[1]
    H3 = w2.shape[1]
    C_pad = wc_pad.shape[1]  # == LANE_PAD

    # --- choose G graphs per grid step so G*N ~= MAX_ROWS_PER_STEP and G | B ---
    G = max(1, min(B, MAX_ROWS_PER_STEP // max(N, 1)))
    while B % G:
        G -= 1
    S = B // G

    # bf16 inputs: adj is the dominant O(N^2) term -> halves its DMA / VMEM footprint
    adj_bf = adj.astype(jnp.bfloat16)
    x_bf = x.astype(jnp.bfloat16)

    # --- VMEM budget derived from the actual block sizes (v7x: 64 MiB physical) ---
    in_block_bytes = G * N * N * 2 + G * N * F_in * 2
    out_block_bytes = G * C_pad * 4
    weight_bytes = (2 * (w1.size + w2.size + wc_pad.size)
                    + 4 * (b1.size + b2.size + bc_pad.size))
    interm_bytes = 4 * G * N * (2 * N + 2 * F_in + 3 * H1 + 2 * H3)
    vmem_limit = int(min(100 * 2 ** 20,
                         max(8 * 2 ** 20,
                             4 * (2 * (in_block_bytes + out_block_bytes)
                                  + weight_bytes + interm_bytes))))

    flops_per_step = (2 * G * N * N * (F_in + H1)          # two aggregations
                      + 2 * G * N * (F_in * H1 + H1 * H3)  # feature transforms
                      + 2 * G * H3 * C_pad)                # classifier

    out = pl.pallas_call(
        _sgcn_kernel,
        out_shape=jax.ShapeDtypeStruct((B, C_pad), jnp.float32),
        grid=(S,),
        in_specs=[
            pl.BlockSpec((G, N, N), lambda s: (s, 0, 0)),       # adj: G graphs / step
            pl.BlockSpec((G, N, F_in), lambda s: (s, 0, 0)),    # x
            pl.BlockSpec((F_in, H1), lambda s: (0, 0)),         # w1 (shared, bf16)
            pl.BlockSpec((1, H1), lambda s: (0, 0)),            # b1 (f32)
            pl.BlockSpec((H1, H3), lambda s: (0, 0)),           # w2 (bf16)
            pl.BlockSpec((1, H3), lambda s: (0, 0)),            # b2 (f32)
            pl.BlockSpec((H3, C_pad), lambda s: (0, 0)),        # wc (bf16, lane-padded)
            pl.BlockSpec((1, C_pad), lambda s: (0, 0)),         # bc (f32, lane-padded)
        ],
        out_specs=pl.BlockSpec((G, C_pad), lambda s: (s, 0)),   # (G,128) full-vreg slab
        compiler_params=pltpu.CompilerParams(
            # NOTE(v7x): with S > 1 steps this axis can be core-sharded
            # (pltpu.CORE_PARALLEL); here the whole batch fits in one step.
            dimension_semantics=("parallel",),
            vmem_limit_bytes=vmem_limit,
        ),
        cost_estimate=pl.CostEstimate(
            flops=S * flops_per_step,
            transcendentals=S * 2 * G * N,
            bytes_accessed=S * (in_block_bytes + out_block_bytes) + weight_bytes,
        ),
    )(adj_bf, x_bf, w1, b1, w2, b2, wc_pad, bc_pad)

    return out[:, :num_classes]


def init_params(key, in_feats, h1_feats, h3_feats, num_classes):
    ks = jax.random.split(key, 6)
    scale = 0.1
    w1 = scale * jax.random.normal(ks[0], (in_feats, h1_feats), jnp.float32)
    b1 = scale * jax.random.normal(ks[1], (1, h1_feats), jnp.float32)
    w2 = scale * jax.random.normal(ks[2], (h1_feats, h3_feats), jnp.float32)
    b2 = scale * jax.random.normal(ks[3], (1, h3_feats), jnp.float32)
    wc = scale * jax.random.normal(ks[4], (h3_feats, num_classes), jnp.float32)
    bc = scale * jax.random.normal(ks[5], (1, num_classes), jnp.float32)
    # zero-pad classifier to a full 128-lane output slab (lane-dense store)
    wc_pad = jnp.zeros((h3_feats, LANE_PAD), jnp.float32).at[:, :num_classes].set(wc)
    bc_pad = jnp.zeros((1, LANE_PAD), jnp.float32).at[:, :num_classes].set(bc)
    # MXU operands pre-cast to bf16 once here (not every grid step); biases stay f32
    return (w1.astype(jnp.bfloat16), b1,
            w2.astype(jnp.bfloat16), b2,
            wc_pad.astype(jnp.bfloat16), bc_pad)


if __name__ == "__main__":
    # small, deterministic example: a batch of graphs
    B = 8             # graphs (all processed in one grid step: G*N = 128)
    N = 16            # nodes per graph
    in_feats = 16
    h1_feats = 32
    h3_feats = 32
    num_classes = 3   # "three outcomes"

    key = jax.random.PRNGKey(0)
    k_adj, k_w, k_x, k_p = jax.random.split(key, 4)

    # random directed graphs: binary mask * strictly positive edge weights
    mask = (jax.random.uniform(k_adj, (B, N, N)) < 0.3).astype(jnp.float32)
    edge_w = jax.random.uniform(k_w, (B, N, N), minval=0.1, maxval=1.0)
    adj = mask * edge_w                                  # A[dst, src]

    x = jax.random.normal(k_x, (B, N, in_feats), jnp.float32)
    params = init_params(k_p, in_feats, h1_feats, h3_feats, num_classes)

    out = sgcn_forward(adj, x, params, num_classes)
    jax.block_until_ready(out)

    assert out.shape == (B, num_classes)
    assert bool(jnp.all(jnp.isfinite(out)))
    print("KERNEL_OK")
</pallas_src>

<mosaic_0001>
module attributes {stable_mosaic.version = 11 : i64} {
  func.func @_sgcn_kernel(%arg0: i32, %arg1: memref<8x16x16xbf16, #tpu.memory_space<vmem>>, %arg2: memref<8x16x16xbf16, #tpu.memory_space<vmem>>, %arg3: memref<16x32xbf16, #tpu.memory_space<vmem>>, %arg4: memref<1x32xf32, #tpu.memory_space<vmem>>, %arg5: memref<32x32xbf16, #tpu.memory_space<vmem>>, %arg6: memref<1x32xf32, #tpu.memory_space<vmem>>, %arg7: memref<32x128xbf16, #tpu.memory_space<vmem>>, %arg8: memref<1x128xf32, #tpu.memory_space<vmem>>, %arg9: memref<8x128xf32, #tpu.memory_space<vmem>>) attributes {dimension_semantics = [#tpu.dimension_semantics<parallel>], iteration_bounds = array<i64: 1>, scalar_prefetch = 0 : i64, scratch_operands = 0 : i64, tpu.core_type = #tpu.core_type<tc>, window_params = [{transform_indices = @transform_0, window_bounds = array<i64: 8, 16, 16>}, {transform_indices = @transform_1, window_bounds = array<i64: 8, 16, 16>}, {pipeline_mode = #tpu.pipeline_mode<synchronous>, transform_indices = @transform_2, window_bounds = array<i64: 16, 32>}, {pipeline_mode = #tpu.pipeline_mode<synchronous>, transform_indices = @transform_3, window_bounds = array<i64: 1, 32>}, {pipeline_mode = #tpu.pipeline_mode<synchronous>, transform_indices = @transform_4, window_bounds = array<i64: 32, 32>}, {pipeline_mode = #tpu.pipeline_mode<synchronous>, transform_indices = @transform_5, window_bounds = array<i64: 1, 32>}, {pipeline_mode = #tpu.pipeline_mode<synchronous>, transform_indices = @transform_6, window_bounds = array<i64: 32, 128>}, {pipeline_mode = #tpu.pipeline_mode<synchronous>, transform_indices = @transform_7, window_bounds = array<i64: 1, 128>}, {transform_indices = @transform_8, window_bounds = array<i64: 8, 128>}]} {
    %c0 = arith.constant 0 : index
    %c0_0 = arith.constant 0 : index
    %c0_1 = arith.constant 0 : index
    %0 = vector.load %arg1[%c0, %c0_0, %c0_1] : memref<8x16x16xbf16, #tpu.memory_space<vmem>>, vector<8x16x16xbf16>
    %1 = arith.extf %0 : vector<8x16x16xbf16> to vector<8x16x16xf32>
    %cst = arith.constant dense<0.000000e+00> : vector<8x16xf32>
    %2 = vector.multi_reduction <add>, %1, %cst [2] : vector<8x16x16xf32> to vector<8x16xf32>
    %3 = vector.shape_cast %2 : vector<8x16xf32> to vector<8x16x1xf32>
    %cst_2 = arith.constant 0.000000e+00 : f32
    %4 = vector.broadcast %cst_2 : f32 to vector<8x16x1xf32>
    %5 = arith.cmpf ogt, %3, %4 : vector<8x16x1xf32>
    %cst_3 = arith.constant 1.000000e+00 : f32
    %6 = vector.broadcast %cst_3 : f32 to vector<8x16x1xf32>
    %7 = arith.select %5, %3, %6 : vector<8x16x1xi1>, vector<8x16x1xf32>
    %8 = tpu.reciprocal %7 {approx = true} : vector<8x16x1xf32> -> vector<8x16x1xf32>
    %9 = arith.truncf %8 : vector<8x16x1xf32> to vector<8x16x1xbf16>
    %10 = vector.broadcast %9 : vector<8x16x1xbf16> to vector<8x16x16xbf16>
    %11 = arith.mulf %0, %10 : vector<8x16x16xbf16>
    %cst_4 = arith.constant 0.000000e+00 : bf16
    %12 = vector.broadcast %cst_4 : bf16 to vector<8x16x16xbf16>
    %13 = arith.cmpf ogt, %0, %12 : vector<8x16x16xbf16>
    %14 = arith.extui %13 : vector<8x16x16xi1> to vector<8x16x16xi32>
    %15 = arith.sitofp %14 : vector<8x16x16xi32> to vector<8x16x16xf32>
    %cst_5 = arith.constant dense<0.000000e+00> : vector<8x16xf32>
    %16 = vector.multi_reduction <add>, %15, %cst_5 [2] : vector<8x16x16xf32> to vector<8x16xf32>
    %17 = vector.shape_cast %16 : vector<8x16xf32> to vector<8x16x1xf32>
    %cst_6 = arith.constant 1.000000e+00 : f32
    %18 = vector.broadcast %cst_6 : f32 to vector<8x16x1xf32>
    %19 = arith.addf %17, %18 : vector<8x16x1xf32>
    %20 = tpu.reciprocal %19 {approx = true} : vector<8x16x1xf32> -> vector<8x16x1xf32>
    %c0_7 = arith.constant 0 : index
    %c0_8 = arith.constant 0 : index
    %c0_9 = arith.constant 0 : index
    %21 = vector.load %arg2[%c0_7, %c0_8, %c0_9] : memref<8x16x16xbf16, #tpu.memory_space<vmem>>, vector<8x16x16xbf16>
    "tpu.trace_start"() <{level = 10 : i32, message = "gij,gjf->gif"}> : () -> ()
    %cst_10 = arith.constant dense<0.000000e+00> : vector<8x16x16xf32>
    %22 = tpu.matmul %11, %21, %cst_10 {dimension_numbers = #tpu.dot_dimension_numbers<[2], [1], [1], [2], [0, 0, 0, 1, 1, 2], [0], [0]>} : vector<8x16x16xbf16>, vector<8x16x16xbf16>, vector<8x16x16xf32> -> vector<8x16x16xf32>
    "tpu.trace_stop"() : () -> ()
    %23 = arith.extf %21 : vector<8x16x16xbf16> to vector<8x16x16xf32>
    %24 = arith.addf %22, %23 : vector<8x16x16xf32>
    %25 = vector.broadcast %20 : vector<8x16x1xf32> to vector<8x16x16xf32>
    %26 = arith.mulf %24, %25 : vector<8x16x16xf32>
    %27 = vector.shape_cast %26 : vector<8x16x16xf32> to vector<128x16xf32>
    %28 = arith.truncf %27 : vector<128x16xf32> to vector<128x16xbf16>
    %c0_11 = arith.constant 0 : index
    %c0_12 = arith.constant 0 : index
    %29 = vector.load %arg3[%c0_11, %c0_12] : memref<16x32xbf16, #tpu.memory_space<vmem>>, vector<16x32xbf16>
    %cst_13 = arith.constant dense<0.000000e+00> : vector<128x32xf32>
    %30 = tpu.matmul %28, %29, %cst_13 {dimension_numbers = #tpu.dot_dimension_numbers<[1], [0], [0], [1], [0, 0, 1, 1], [], []>} : vector<128x16xbf16>, vector<16x32xbf16>, vector<128x32xf32> -> vector<128x32xf32>
    %c0_14 = arith.constant 0 : index
    %c0_15 = arith.constant 0 : index
    %31 = vector.load %arg4[%c0_14, %c0_15] : memref<1x32xf32, #tpu.memory_space<vmem>>, vector<1x32xf32>
    %32 = vector.broadcast %31 : vector<1x32xf32> to vector<128x32xf32>
    %33 = arith.addf %30, %32 : vector<128x32xf32>
    %cst_16 = arith.constant 0.000000e+00 : f32
    %34 = vector.broadcast %cst_16 : f32 to vector<128x32xf32>
    %35 = arith.maximumf %33, %34 : vector<128x32xf32>
    %36 = vector.shape_cast %35 : vector<128x32xf32> to vector<8x16x32xf32>
    %37 = arith.truncf %36 : vector<8x16x32xf32> to vector<8x16x32xbf16>
    "tpu.trace_start"() <{level = 10 : i32, message = "gij,gjf->gif"}> : () -> ()
    %cst_17 = arith.constant dense<0.000000e+00> : vector<8x16x32xf32>
    %38 = tpu.matmul %11, %37, %cst_17 {dimension_numbers = #tpu.dot_dimension_numbers<[2], [1], [1], [2], [0, 0, 0, 1, 1, 2], [0], [0]>} : vector<8x16x16xbf16>, vector<8x16x32xbf16>, vector<8x16x32xf32> -> vector<8x16x32xf32>
    "tpu.trace_stop"() : () -> ()
    %39 = arith.addf %38, %36 : vector<8x16x32xf32>
    %40 = vector.broadcast %20 : vector<8x16x1xf32> to vector<8x16x32xf32>
    %41 = arith.mulf %39, %40 : vector<8x16x32xf32>
    %42 = vector.shape_cast %41 : vector<8x16x32xf32> to vector<128x32xf32>
    %43 = arith.truncf %42 : vector<128x32xf32> to vector<128x32xbf16>
    %c0_18 = arith.constant 0 : index
    %c0_19 = arith.constant 0 : index
    %44 = vector.load %arg5[%c0_18, %c0_19] : memref<32x32xbf16, #tpu.memory_space<vmem>>, vector<32x32xbf16>
    %cst_20 = arith.constant dense<0.000000e+00> : vector<128x32xf32>
    %45 = tpu.matmul %43, %44, %cst_20 {dimension_numbers = #tpu.dot_dimension_numbers<[1], [0], [0], [1], [0, 0, 1, 1], [], []>} : vector<128x32xbf16>, vector<32x32xbf16>, vector<128x32xf32> -> vector<128x32xf32>
    %c0_21 = arith.constant 0 : index
    %c0_22 = arith.constant 0 : index
    %46 = vector.load %arg6[%c0_21, %c0_22] : memref<1x32xf32, #tpu.memory_space<vmem>>, vector<1x32xf32>
    %47 = vector.broadcast %46 : vector<1x32xf32> to vector<128x32xf32>
    %48 = arith.addf %45, %47 : vector<128x32xf32>
    %cst_23 = arith.constant 0.000000e+00 : f32
    %49 = vector.broadcast %cst_23 : f32 to vector<128x32xf32>
    %50 = arith.maximumf %48, %49 : vector<128x32xf32>
    %51 = vector.shape_cast %50 : vector<128x32xf32> to vector<8x16x32xf32>
    %cst_24 = arith.constant dense<0.000000e+00> : vector<8x32xf32>
    %52 = vector.multi_reduction <add>, %51, %cst_24 [1] : vector<8x16x32xf32> to vector<8x32xf32>
    %cst_25 = arith.constant 1.600000e+01 : f32
    %53 = vector.broadcast %cst_25 : f32 to vector<8x32xf32>
    %54 = arith.divf %52, %53 : vector<8x32xf32>
    %55 = arith.truncf %54 : vector<8x32xf32> to vector<8x32xbf16>
    %c0_26 = arith.constant 0 : index
    %c0_27 = arith.constant 0 : index
    %56 = vector.load %arg7[%c0_26, %c0_27] : memref<32x128xbf16, #tpu.memory_space<vmem>>, vector<32x128xbf16>
    %cst_28 = arith.constant dense<0.000000e+00> : vector<8x128xf32>
    %57 = tpu.matmul %55, %56, %cst_28 {dimension_numbers = #tpu.dot_dimension_numbers<[1], [0], [0], [1], [0, 0, 1, 1], [], []>} : vector<8x32xbf16>, vector<32x128xbf16>, vector<8x128xf32> -> vector<8x128xf32>
    %c0_29 = arith.constant 0 : index
    %c0_30 = arith.constant 0 : index
    %58 = vector.load %arg8[%c0_29, %c0_30] : memref<1x128xf32, #tpu.memory_space<vmem>>, vector<1x128xf32>
    %59 = vector.broadcast %58 : vector<1x128xf32> to vector<8x128xf32>
    %60 = arith.addf %57, %59 : vector<8x128xf32>
    %c0_31 = arith.constant 0 : index
    %c0_32 = arith.constant 0 : index
    %61 = vector.load %arg9[%c0_31, %c0_32] : memref<8x128xf32, #tpu.memory_space<vmem>>, vector<8x128xf32>
    tpu.vector_store %arg9[%c0_31, %c0_32], %60 {strides = array<i32>} : memref<8x128xf32, #tpu.memory_space<vmem>>, vector<8x128xf32>,
    return
  }
  func.func @transform_0(%arg0: i32) -> (i32, i32, i32) {
    %c0_i32 = arith.constant 0 : i32
    %c0_i32_0 = arith.constant 0 : i32
    %c0_i32_1 = arith.constant 0 : i32
    return %arg0, %c0_i32, %c0_i32_0 : i32, i32, i32
  }
  func.func @transform_1(%arg0: i32) -> (i32, i32, i32) {
    %c0_i32 = arith.constant 0 : i32
    %c0_i32_0 = arith.constant 0 : i32
    %c0_i32_1 = arith.constant 0 : i32
    return %arg0, %c0_i32, %c0_i32_0 : i32, i32, i32
  }
  func.func @transform_2(%arg0: i32) -> (i32, i32) {
    %c0_i32 = arith.constant 0 : i32
    %c0_i32_0 = arith.constant 0 : i32
    %c0_i32_1 = arith.constant 0 : i32
    return %c0_i32, %c0_i32_0 : i32, i32
  }
  func.func @transform_3(%arg0: i32) -> (i32, i32) {
    %c0_i32 = arith.constant 0 : i32
    %c0_i32_0 = arith.constant 0 : i32
    %c0_i32_1 = arith.constant 0 : i32
    return %c0_i32, %c0_i32_0 : i32, i32
  }
  func.func @transform_4(%arg0: i32) -> (i32, i32) {
    %c0_i32 = arith.constant 0 : i32
    %c0_i32_0 = arith.constant 0 : i32
    %c0_i32_1 = arith.constant 0 : i32
    return %c0_i32, %c0_i32_0 : i32, i32
  }
  func.func @transform_5(%arg0: i32) -> (i32, i32) {
    %c0_i32 = arith.constant 0 : i32
    %c0_i32_0 = arith.constant 0 : i32
    %c0_i32_1 = arith.constant 0 : i32
    return %c0_i32, %c0_i32_0 : i32, i32
  }
  func.func @transform_6(%arg0: i32) -> (i32, i32) {
    %c0_i32 = arith.constant 0 : i32
    %c0_i32_0 = arith.constant 0 : i32
    %c0_i32_1 = arith.constant 0 : i32
    return %c0_i32, %c0_i32_0 : i32, i32
  }
  func.func @transform_7(%arg0: i32) -> (i32, i32) {
    %c0_i32 = arith.constant 0 : i32
    %c0_i32_0 = arith.constant 0 : i32
    %c0_i32_1 = arith.constant 0 : i32
    return %c0_i32, %c0_i32_0 : i32, i32
  }
  func.func @transform_8(%arg0: i32) -> (i32, i32) {
    %c0_i32 = arith.constant 0 : i32
    %c0_i32_0 = arith.constant 0 : i32
    return %arg0, %c0_i32 : i32, i32
  }
}

</mosaic_0001>

<bundles_post_ra>
// kernel: tpu_custom_call.1
= control target key start
LH: loop header
LB: loop body
LE: loop exit
PB: predicated region body
PF: predicated region fallthrough
CT: control target
= control target key end

     0   :  { %13 = vsyncpa [#allocation3], 0  ;;  %s3121_s0 = inlined_call_operand.hbm [shape: bf16[8,16,16], index: 0, kind: input, shape index: {}]   ;;  %s3122_s1 = inlined_call_operand.hbm [shape: bf16[8,16,16], index: 1, kind: input, shape index: {}]   ;;  %s3123_s2 = inlined_call_operand.hbm [shape: bf16[16,32], index: 2, kind: input, shape index: {}]   ;;  %s3124_s3 = inlined_call_operand.vmem [shape: f32[1,32], index: 3, kind: input, shape index: {}]   ;;  %s3125_s4 = inlined_call_operand.hbm [shape: bf16[32,32], index: 4, kind: input, shape index: {}]   ;;  %s3126_s5 = inlined_call_operand.vmem [shape: f32[1,32], index: 5, kind: input, shape index: {}]   ;;  %s3127_s6 = inlined_call_operand.vmem [shape: bf16[32,128], index: 6, kind: input, shape index: {}]   ;;  %s3128_s7 = inlined_call_operand.vmem [shape: f32[1,128], index: 7, kind: input, shape index: {}]   ;;  %s3129_s8 = inlined_call_operand.hbm [shape: f32[8,128], index: 8, kind: output, shape index: {}]  }
   0x1   :  { %14 = vsyncpa [#allocation6], 0 }
   0x2   :  { %15 = vsyncpa [#allocation9], 0 }
   0x3   :  { %16 = vsyncpa [#allocation4], 0  ;;  %s2410_s27 = smov [#allocation5]   ;;  %s2411_s29 = smov [#allocation2]  }
   0x4   :  { %s34_s28 = sshll.u32 %s2410_s27, 4  ;;  %s22_s30 = sshll.u32 %s2411_s29, 4  ;;  %s35_s28 = int_to_ptr.vmem [resolvable:$true] %s34_s28  ;;  %s2467_s30 = int_to_ptr.vmem [resolvable:$true] %s22_s30 }
   0x5   :  { %s2292_s11 = scalar_lea.hbm %s3122_s1, 1024 }
   0x6   :  { %p2293_p0 = scmp.ne.s32.totalorder %s3122_s1, %s2292_s11  ;;  %p2296_p1 = scmp.lt.u32.totalorder %s2292_s11, %s3122_s1 }
   0x8   :  { %p2298_p2 = pnand %p2296_p1, %p2293_p0 }
   0xa   :  { %2301 = shalt.err (!%p2298_p2)
}
   0xb   :  { %s2302_s16 = scalar_lea.vmem %s35_s28, 1024  ;;  %p2307_p4 = scmp.lt.s32.totalorder %s35_s28, %s35_s28 }
   0xc   :  { %p2303_p3 = scmp.ne.s32.totalorder %s35_s28, %s2302_s16  ;;  %p2308_p5 = scmp.lt.s32.totalorder %s2302_s16, %s2302_s16 }
   0xe   :  { %p2309_p6 = por %p2308_p5, %p2307_p4 }
  0x10   :  { %p2310_p7 = pnand %p2309_p6, %p2303_p3 }
  0x12   :  { %2313 = shalt.err (!%p2310_p7)
}
  0x13   :  { %s2412_s17 = smov 64   ;;  %s2413_s18 = smov 4  }
  0x14   :  { %40 = dma.hbm_to_vmem [thread:$0]  %s3122_s1, 1024, %s35_s28, [#allocation6], %s2412_s17, %s2412_s17, %s2413_s18  }
  0x15   :  { %s2314_s23 = scalar_lea.hbm %s3121_s0, 1024 }
  0x16   :  { %p2315_p8 = scmp.ne.s32.totalorder %s3121_s0, %s2314_s23  ;;  %p2318_p9 = scmp.lt.u32.totalorder %s2314_s23, %s3121_s0 }
  0x18   :  { %p2320_p10 = pnand %p2318_p9, %p2315_p8 }
  0x1a   :  { %2323 = shalt.err (!%p2320_p10)
}
  0x1b   :  { %s2324_s29 = scalar_lea.vmem %s2467_s30, 1024  ;;  %p2329_p12 = scmp.lt.s32.totalorder %s2467_s30, %s2467_s30 }
  0x1c   :  { %p2325_p11 = scmp.ne.s32.totalorder %s2467_s30, %s2324_s29  ;;  %p2330_p13 = scmp.lt.s32.totalorder %s2324_s29, %s2324_s29 }
  0x1e   :  { %p2331_p0 = por %p2330_p13, %p2329_p12 }
  0x20   :  { %p2332_p1 = pnand %p2331_p0, %p2325_p11 }
  0x22   :  { %2335 = shalt.err (!%p2332_p1)
}
  0x23   :  { %28 = dma.hbm_to_vmem [thread:$0]  %s3121_s0, 1024, %s2467_s30, [#allocation3], %s2412_s17, %s2412_s17, %s2413_s18  }
  0x24   :  { %s2414_s9 = smov [#allocation7]   ;;  %s2415_s11 = smov [#allocation8]  }
  0x25   :  { %s46_s10 = sshll.u32 %s2414_s9, 4  ;;  %s60_s12 = sshll.u32 %s2415_s11, 4  ;;  %s47_s10 = int_to_ptr.vmem [resolvable:$true] %s46_s10  ;;  %s2504_s12 = int_to_ptr.vmem [resolvable:$true] %s60_s12 }
  0x26   :  { %s2336_s15 = scalar_lea.hbm %s3123_s2, 128 }
  0x27   :  { %p2337_p2 = scmp.ne.s32.totalorder %s3123_s2, %s2336_s15  ;;  %p2340_p3 = scmp.lt.u32.totalorder %s2336_s15, %s3123_s2 }
  0x29   :  { %p2342_p4 = pnand %p2340_p3, %p2337_p2 }
  0x2b   :  { %2345 = shalt.err (!%p2342_p4)
}
  0x2c   :  { %s2346_s0 = scalar_lea.vmem %s47_s10, 128  ;;  %p2351_p6 = scmp.lt.s32.totalorder %s47_s10, %s47_s10 }
  0x2d   :  { %p2347_p5 = scmp.ne.s32.totalorder %s47_s10, %s2346_s0  ;;  %p2352_p7 = scmp.lt.s32.totalorder %s2346_s0, %s2346_s0 }
  0x2f   :  { %p2353_p8 = por %p2352_p7, %p2351_p6 }
  0x31   :  { %p2354_p9 = pnand %p2353_p8, %p2347_p5 }
  0x33   :  { %2357 = shalt.err (!%p2354_p9)
}
  0x34   :  { %52 = dma.hbm_to_vmem [thread:$0]  %s3123_s2, 128, %s47_s10, [#allocation6], %s2412_s17, %s2412_s17, %s2413_s18  }
  0x35   :  { %s2358_s25 = scalar_lea.hbm %s3125_s4, 256 }
  0x36   :  { %p2359_p10 = scmp.ne.s32.totalorder %s3125_s4, %s2358_s25  ;;  %p2362_p11 = scmp.lt.u32.totalorder %s2358_s25, %s3125_s4 }
  0x38   :  { %p2364_p12 = pnand %p2362_p11, %p2359_p10 }
  0x3a   :  { %2367 = shalt.err (!%p2364_p12)
}
  0x3b   :  { %s2368_s28 = scalar_lea.vmem %s2504_s12, 256  ;;  %p2373_p0 = scmp.lt.s32.totalorder %s2504_s12, %s2504_s12 }
  0x3c   :  { %p2369_p13 = scmp.ne.s32.totalorder %s2504_s12, %s2368_s28  ;;  %p2374_p1 = scmp.lt.s32.totalorder %s2368_s28, %s2368_s28 }
  0x3e   :  { %p2375_p2 = por %p2374_p1, %p2373_p0 }
  0x40   :  { %p2376_p3 = pnand %p2375_p2, %p2369_p13 }
  0x42   :  { %2379 = shalt.err (!%p2376_p3)
}
  0x43   :  { %66 = dma.hbm_to_vmem [thread:$0]  %s3125_s4, 256, %s2504_s12, [#allocation9], %s2412_s17, %s2412_s17, %s2413_s18  }
  0x44   :  { %2402 = dma.done.wait [#allocation3], 1024  }
  0x45   :  { %2403 = vsyncadd [#allocation3], 4294966272 }
  0x46   :  { %2404 = dma.done.wait [#allocation6], 1152  }
  0x47   :  { %2405 = vsyncadd [#allocation6], 4294966144 }
  0x48   :  { %2406 = dma.done.wait [#allocation9], 256  }
  0x49   :  { %2407 = vsyncadd [#allocation9], 4294967040  ;;  %vm120_vm0 = vcmask 130048   ;;  %v2541_v0 = vld [vmem:[#allocation2] sm:$0xf]  ;;  %v2416_v49 = vmov 0.0  }
  0x4a   :  { %v2543_v1 = vld [vmem:[#allocation2 + $0x8] sm:$0xf]  ;;  %v2545_v2 = vld [vmem:[#allocation2 + $0x4] sm:$0xf]  ;;  %v104_v3 = vunpack.c.l.bf16 %v2541_v0  ;;  %v2550_v6 = vld [vmem:[#allocation2 + $0xc] sm:$0xf]  ;;  %2053 = vmatprep.subr.bf16.mxu1 %v2416_v49  ;;  %2065 = vmatprep.subr.bf16.mxu0 %v2416_v49 }
  0x4b   :  { %v106_v4 = vunpack.c.l.bf16 %v2543_v1  ;;  %v105_v5 = vunpack.c.l.bf16 %v2545_v2  ;;  %v107_v7 = vunpack.c.l.bf16 %v2550_v6  ;;  %v2553_v8 = vld [vmem:[#allocation2 + $0x14] sm:$0xf]  ;;  %v2555_v9 = vld [vmem:[#allocation2 + $0x10] sm:$0xf]  ;;  %v2563_v16 = vld [vmem:[#allocation2 + $0x1c] sm:$0xf] }
  0x4c   :  { %v121_v10 = vsel %vm120_vm0, %v104_v3, 0.0  ;;  %v109_v14 = vunpack.c.l.bf16 %v2553_v8  ;;  %v108_v15 = vunpack.c.l.bf16 %v2555_v9  ;;  %v2565_v17 = vld [vmem:[#allocation2 + $0x18] sm:$0xf]  ;;  %v2567_v18 = vld [vmem:[#allocation2 + $0x24] sm:$0xf]  ;;  %v111_v21 = vunpack.c.l.bf16 %v2563_v16  ;;  %v2615_v50 = vld [vmem:[#allocation5 + $0x10] sm:$0xff]  }
  0x4d   :  { %v127_v11 = vsel %vm120_vm0, %v106_v4, 0.0  ;;  %122 = vadd.xlane.f32.xlu0 %v121_v10  ;;  %v124_v12 = vsel %vm120_vm0, %v105_v5, 0.0  ;;  %v130_v13 = vsel %vm120_vm0, %v107_v7, 0.0  ;;  %v110_v22 = vunpack.c.l.bf16 %v2565_v17  ;;  %v2573_v23 = vld [vmem:[#allocation2 + $0x20] sm:$0xf]  ;;  %2066 = vmatpush3.bf16.msra.mxu0 %v2615_v50  ;;  %s2421_s14 = smov [#allocation10]  }
  0x4e   :  { %128 = vadd.xlane.f32.xlu1 %v127_v11  ;;  %v136_v19 = vsel %vm120_vm0, %v109_v14, 0.0  ;;  %v133_v20 = vsel %vm120_vm0, %v108_v15, 0.0  ;;  %v142_v24 = vsel %vm120_vm0, %v111_v21, 0.0  ;;  %v113_v26 = vunpack.c.l.bf16 %v2567_v18  ;;  %v2579_v28 = vld [vmem:[#allocation2 + $0x2c] sm:$0xf]  ;;  %v2605_v48 = vld [vmem:[#allocation5] sm:$0xff]   ;;  %2077 = vmatprep.subr.bf16.mxu0 %v2416_v49 }
  0x4f   :  { %v139_v25 = vsel %vm120_vm0, %v110_v22, 0.0  ;;  %v112_v27 = vunpack.c.l.bf16 %v2573_v23  ;;  %v2581_v29 = vld [vmem:[#allocation2 + $0x28] sm:$0xf]  ;;  %v115_v32 = vunpack.c.l.bf16 %v2579_v28  ;;  %v2587_v34 = vld [vmem:[#allocation2 + $0x34] sm:$0xf]  ;;  %2054 = vmatpush3.bf16.msra.mxu1 %v2605_v48  ;;  %vm2417_vm1 = vmmov 0  }
  0x50   :  { %v148_v30 = vsel %vm120_vm0, %v113_v26, 0.0  ;;  %v114_v33 = vunpack.c.l.bf16 %v2581_v29  ;;  %v2589_v35 = vld [vmem:[#allocation2 + $0x30] sm:$0xf]  ;;  %v117_v38 = vunpack.c.l.bf16 %v2587_v34  ;;  %v2595_v40 = vld [vmem:[#allocation2 + $0x3c] sm:$0xf]  ;;  %2059 = vmatprep.subr.bf16.mxu1 %v2416_v49  ;;  %2055 = vmatprep.mubr.msk.bf16.mxu1 %vm2417_vm1, %v2416_v49  ;;  %vm377_vm2 = vcmp.gt.bf16.partialorder %v2541_v0, 0 }
  0x51   :  { %125 = vadd.xlane.f32.xlu0 %v124_v12  ;;  %v145_v31 = vsel %vm120_vm0, %v112_v27, 0.0  ;;  %v154_v36 = vsel %vm120_vm0, %v115_v32, 0.0  ;;  %v116_v39 = vunpack.c.l.bf16 %v2589_v35  ;;  %v2597_v41 = vld [vmem:[#allocation2 + $0x38] sm:$0xf]  ;;  %v119_v44 = vunpack.c.l.bf16 %v2595_v40  ;;  %2067 = vmatprep.mubr.msk.bf16.mxu0 %vm2417_vm1, %v2416_v49  ;;  %s1915_s15 = sshll.u32 %s2421_s14, 4  ;;  %s1916_s15 = int_to_ptr.vmem [resolvable:$true] %s1915_s15 }
  0x52   :  { %131 = vadd.xlane.f32.xlu1 %v130_v13  ;;  %v151_v37 = vsel %vm120_vm0, %v114_v33, 0.0  ;;  %v160_v42 = vsel %vm120_vm0, %v117_v38, 0.0  ;;  %v118_v45 = vunpack.c.l.bf16 %v2597_v41  ;;  %vm378_vm3 = vcmp.gt.bf16.partialorder %v2545_v2, 0  ;;  %s2380_s16 = scalar_lea.vmem %s1916_s15, 128  ;;  %p2385_p5 = scmp.lt.s32.totalorder %s1916_s15, %s1916_s15 }
  0x53   :  { %v157_v43 = vsel %vm120_vm0, %v116_v39, 0.0  ;;  %v166_v46 = vsel %vm120_vm0, %v119_v44, 0.0  ;;  %vm380_vm4 = vcmp.gt.bf16.partialorder %v2550_v6, 0  ;;  %v2418_v51 = vmov 0   ;;  %p2381_p4 = scmp.ne.s32.totalorder %s1916_s15, %s2380_s16  ;;  %p2386_p6 = scmp.lt.s32.totalorder %s2380_s16, %s2380_s16 }
  0x54   :  { %v163_v47 = vsel %vm120_vm0, %v118_v45, 0.0  ;;  %v393_v52 = vsel %vm377_vm2, 65537, %v2418_v51  ;;  %v394_v53 = vsel %vm378_vm3, 65537, %v2418_v51  ;;  %v396_v54 = vsel %vm380_vm4, 65537, %v2418_v51 }
  0x55   :  { %134 = vadd.xlane.f32.xlu0 %v133_v20  ;;  %vm379_vm5 = vcmp.gt.bf16.partialorder %v2543_v1, 0  ;;  %v409_v55 = vunpack.c.l.b16 %v393_v52  ;;  %v410_v56 = vunpack.c.l.b16 %v394_v53  ;;  %v412_v57 = vunpack.c.l.b16 %v396_v54  ;;  %p2387_p7 = por %p2386_p6, %p2385_p5 }
  0x56   :  { %137 = vadd.xlane.f32.xlu1 %v136_v19  ;;  %v395_v58 = vsel %vm379_vm5, 65537, %v2418_v51  ;;  %vm382_vm6 = vcmp.gt.bf16.partialorder %v2553_v8, 0  ;;  %vm381_vm7 = vcmp.gt.bf16.partialorder %v2555_v9, 0  ;;  %vm384_vm8 = vcmp.gt.bf16.partialorder %v2563_v16, 0 }
  0x57   :  { %v411_v59 = vunpack.c.l.b16 %v395_v58  ;;  %vm425_vm9 = vcmp.ne.s32.totalorder %v409_v55, 0  ;;  %vm426_vm10 = vcmp.ne.s32.totalorder %v410_v56, 0  ;;  %vm428_vm11 = vcmp.ne.s32.totalorder %v412_v57, 0  ;;  %p2388_p8 = pnand %p2387_p7, %p2381_p4 }
  0x58   :  { %v398_v60 = vsel %vm382_vm6, 65537, %v2418_v51  ;;  %v1926_v61 = vsel %vm425_vm9, 1.0, %v2416_v49  ;;  %v1927_v62 = vsel %vm426_vm10, 1.0, %v2416_v49  ;;  %v1929_v63 = vsel %vm428_vm11, 1.0, %v2416_v49 }
  0x59   :  { %140 = vadd.xlane.f32.xlu0 %v139_v25  ;;  %vm427_vm12 = vcmp.ne.s32.totalorder %v411_v59, 0  ;;  %v473_v3 = vsel %vm120_vm0, %v1926_v61, 0.0  ;;  %v476_v4 = vsel %vm120_vm0, %v1927_v62, 0.0  ;;  %v482_v5 = vsel %vm120_vm0, %v1929_v63, 0.0 }
  0x5a   :  { %143 = vadd.xlane.f32.xlu1 %v142_v24  ;;  %v1928_v7 = vsel %vm427_vm12, 1.0, %v2416_v49  ;;  %v414_v11 = vunpack.c.l.b16 %v398_v60  ;;  %v397_v12 = vsel %vm381_vm7, 65537, %v2418_v51  ;;  %v400_v13 = vsel %vm384_vm8, 65537, %v2418_v51 }
  0x5b   :  { %v479_v10 = vsel %vm120_vm0, %v1928_v7, 0.0  ;;  %v413_v14 = vunpack.c.l.b16 %v397_v12  ;;  %v416_v15 = vunpack.c.l.b16 %v400_v13  ;;  %vm383_vm13 = vcmp.gt.bf16.partialorder %v2565_v17, 0 }
  0x5c   :  { %vm386_vm14 = vcmp.gt.bf16.partialorder %v2567_v18, 0  ;;  %vm430_vm15 = vcmp.ne.s32.totalorder %v414_v11, 0  ;;  %v399_v19 = vsel %vm383_vm13, 65537, %v2418_v51  ;;  %vm385_vm2 = vcmp.gt.bf16.partialorder %v2573_v23, 0 }
  0x5d   :  { %146 = vadd.xlane.f32.xlu0 %v145_v31  ;;  %v402_v20 = vsel %vm386_vm14, 65537, %v2418_v51  ;;  %v1931_v21 = vsel %vm430_vm15, 1.0, %v2416_v49  ;;  %vm429_vm3 = vcmp.ne.s32.totalorder %v413_v14, 0  ;;  %vm432_vm4 = vcmp.ne.s32.totalorder %v416_v15, 0 }
  0x5e   :  { %149 = vadd.xlane.f32.xlu1 %v148_v30  ;;  %v415_v22 = vunpack.c.l.b16 %v399_v19  ;;  %v488_v24 = vsel %vm120_vm0, %v1931_v21, 0.0  ;;  %v1930_v25 = vsel %vm429_vm3, 1.0, %v2416_v49  ;;  %v418_v26 = vunpack.c.l.b16 %v402_v20 }
  0x5f   :  { %v485_v27 = vsel %vm120_vm0, %v1930_v25, 0.0  ;;  %v1933_v30 = vsel %vm432_vm4, 1.0, %v2416_v49  ;;  %v401_v31 = vsel %vm385_vm2, 65537, %v2418_v51  ;;  %vm387_vm6 = vcmp.gt.bf16.partialorder %v2581_v29, 0 }
  0x60   :  { %vm431_vm5 = vcmp.ne.s32.totalorder %v415_v22, 0  ;;  %v417_v33 = vunpack.c.l.b16 %v401_v31  ;;  %vm434_vm7 = vcmp.ne.s32.totalorder %v418_v26, 0  ;;  %vm388_vm8 = vcmp.gt.bf16.partialorder %v2579_v28, 0 }
  0x61   :  { %152 = vadd.xlane.f32.xlu0 %v151_v37  ;;  %v1932_v32 = vsel %vm431_vm5, 1.0, %v2416_v49  ;;  %v494_v37 = vsel %vm120_vm0, %v1933_v30, 0.0  ;;  %v404_v39 = vsel %vm388_vm8, 65537, %v2418_v51  ;;  %vm390_vm10 = vcmp.gt.bf16.partialorder %v2587_v34, 0 }
  0x62   :  { %155 = vadd.xlane.f32.xlu1 %v154_v36  ;;  %v403_v36 = vsel %vm387_vm6, 65537, %v2418_v51  ;;  %vm433_vm9 = vcmp.ne.s32.totalorder %v417_v33, 0  ;;  %vm389_vm11 = vcmp.gt.bf16.partialorder %v2589_v35, 0  ;;  %v1935_v44 = vsel %vm434_vm7, 1.0, %v2416_v49 }
  0x63   :  { %v419_v38 = vunpack.c.l.b16 %v403_v36  ;;  %v1934_v45 = vsel %vm433_vm9, 1.0, %v2416_v49  ;;  %vm392_vm14 = vcmp.gt.bf16.partialorder %v2595_v40, 0  ;;  %vm391_vm15 = vcmp.gt.bf16.partialorder %v2597_v41, 0 }
  0x64   :  { %v500_v54 = vsel %vm120_vm0, %v1935_v44, 0.0  ;;  %v497_v55 = vsel %vm120_vm0, %v1934_v45, 0.0  ;;  %v408_v56 = vsel %vm392_vm14, 65537, %v2418_v51  ;;  %v407_v59 = vsel %vm391_vm15, 65537, %v2418_v51 }
  0x65   :  { %158 = vadd.xlane.f32.xlu0 %v157_v43  ;;  %v420_v43 = vunpack.c.l.b16 %v404_v39  ;;  %vm435_vm12 = vcmp.ne.s32.totalorder %v419_v38, 0  ;;  %v424_v60 = vunpack.c.l.b16 %v408_v56  ;;  %v423_v61 = vunpack.c.l.b16 %v407_v59 }
  0x66   :  { %161 = vadd.xlane.f32.xlu1 %v160_v42  ;;  %v491_v42 = vsel %vm120_vm0, %v1932_v32, 0.0  ;;  %v1936_v57 = vsel %vm435_vm12, 1.0, %v2416_v49  ;;  %v2419_v25 = vmov 839922192   ;;  %v2420_v30 = vmov 1985246804  }
  0x67   :  { %vm436_vm13 = vcmp.ne.s32.totalorder %v420_v43, 0  ;;  %v503_v62 = vsel %vm120_vm0, %v1936_v57, 0.0  ;;  %vm440_vm4 = vcmp.ne.s32.totalorder %v424_v60, 0  ;;  %vm439_vm5 = vcmp.ne.s32.totalorder %v423_v61, 0 }
  0x68   :  { %v1937_v58 = vsel %vm436_vm13, 1.0, %v2416_v49  ;;  %v1941_v7 = vsel %vm440_vm4, 1.0, %v2416_v49  ;;  %v234_v26 = vunpack.c.l.s4 %v2419_v25  ;;  %v241_v31 = vunpack.c.l.s4 %v2420_v30 }
  0x69   :  { %164 = vadd.xlane.f32.xlu0 %v163_v47  ;;  %v405_v47 = vsel %vm389_vm11, 65537, %v2418_v51  ;;  %v506_v63 = vsel %vm120_vm0, %v1937_v58, 0.0  ;;  %v518_v11 = vsel %vm120_vm0, %v1941_v7, 0.0 }
  0x6a   :  { %167 = vadd.xlane.f32.xlu1 %v166_v46  ;;  %v406_v46 = vsel %vm390_vm10, 65537, %v2418_v51  ;;  %v421_v53 = vunpack.c.l.b16 %v405_v47  ;;  %v235_v38 = vunpack.c.0.s8 %v234_v26 }
  0x6b   :  { %v422_v52 = vunpack.c.l.b16 %v406_v46 }
  0x6c   :  { %vm437_vm3 = vcmp.ne.s32.totalorder %v421_v53, 0 }
  0x6d   :  { %474 = vadd.xlane.f32.xlu0 %v473_v3  ;;  %vm438_vm2 = vcmp.ne.s32.totalorder %v422_v52, 0 }
  0x6e   :  { %477 = vadd.xlane.f32.xlu1 %v476_v4  ;;  %v1939_v3 = vsel %vm438_vm2, 1.0, %v2416_v49  ;;  %v1938_v4 = vsel %vm437_vm3, 1.0, %v2416_v49 }
  0x6f   :  { %v512_v51 = vsel %vm120_vm0, %v1939_v3, 0.0 }
  0x71   :  { %480 = vadd.xlane.f32.xlu0 %v479_v10  ;;  %v1940_v10 = vsel %vm439_vm5, 1.0, %v2416_v49 }
  0x72   :  { %483 = vadd.xlane.f32.xlu1 %v482_v5  ;;  %v509_v5 = vsel %vm120_vm0, %v1938_v4, 0.0  ;;  %v515_v12 = vsel %vm120_vm0, %v1940_v10, 0.0 }
  0x75   :  { %486 = vadd.xlane.f32.xlu0 %v485_v27  ;;  %v236_v27 = vlaneseq }
  0x76   :  { %489 = vadd.xlane.f32.xlu1 %v488_v24 }
  0x77   :  { %v237_v39 = vshrl.u32 %v236_v27, 7 }
  0x79   :  { %492 = vadd.xlane.f32.xlu0 %v491_v42  ;;  %v242_v42 = vunpack.c.0.s8 %v241_v31  ;;  %v2687_v53 = vsub.s32 %v235_v38, %v237_v39  ;;  %v2705_v31 = vld [vmem:[#allocation5 + $0x20] sm:$0xff]  }
  0x7a   :  { %495 = vadd.xlane.f32.xlu1 %v494_v37 }
  0x7d   :  { %498 = vadd.xlane.f32.xlu0 %v497_v55 }
  0x7e   :  { %501 = vadd.xlane.f32.xlu1 %v500_v54  ;;  %v2689_v54 = vsub.s32 %v242_v42, %v237_v39 }
  0x81   :  { %504 = vadd.xlane.f32.xlu0 %v503_v62 }
  0x82   :  { %507 = vadd.xlane.f32.xlu1 %v506_v63 }
  0x85   :  { %510 = vadd.xlane.f32.xlu0 %v509_v5  ;;  %v2693_v5 = vld [vmem:[#allocation5 + $0x8] sm:$0xff]  }
  0x86   :  { %513 = vadd.xlane.f32.xlu1 %v512_v51 }
  0x89   :  { %516 = vadd.xlane.f32.xlu0 %v515_v12 }
  0x8a   :  { %519 = vadd.xlane.f32.xlu1 %v518_v11 }
  0xda   :  { %v123_v13 = vpop.xlane.xlu0 %122 }
  0xdb   :  { %v129_v14 = vpop.xlane.xlu1 %128  ;;  %vm169_vm6 = vcmp.gt.f32.partialorder %v123_v13, 0.0 }
  0xdc   :  { %vm171_vm7 = vcmp.gt.f32.partialorder %v129_v14, 0.0  ;;  %v185_v15 = vsel %vm169_vm6, %v123_v13, 1.0 }
  0xdd   :  { %v187_v19 = vsel %vm171_vm7, %v129_v14, 1.0  ;;  %2228 = vrcp.f32 %v185_v15 }
  0xde   :  { %v126_v20 = vpop.xlane.xlu0 %125  ;;  %2230 = vrcp.f32 %v187_v19 }
  0xdf   :  { %v132_v21 = vpop.xlane.xlu1 %131  ;;  %vm170_vm8 = vcmp.gt.f32.partialorder %v126_v20, 0.0 }
  0xe0   :  { %vm172_vm9 = vcmp.gt.f32.partialorder %v132_v21, 0.0  ;;  %v186_v22 = vsel %vm170_vm8, %v126_v20, 1.0  ;;  %vm1840_vm8 = vcmask 1042434  }
  0xe1   :  { %v188_v24 = vsel %vm172_vm9, %v132_v21, 1.0  ;;  %2232 = vrcp.f32 %v186_v22  ;;  %vm1842_vm9 = vcmask 1043459  }
  0xe2   :  { %2234 = vrcp.f32 %v188_v24  ;;  %v135_v33 = vpop.xlane.xlu0 %134 }
  0xe3   :  { %v138_v32 = vpop.xlane.xlu1 %137  ;;  %vm173_vm11 = vcmp.gt.f32.partialorder %v135_v33, 0.0 }
  0xe4   :  { %vm174_vm10 = vcmp.gt.f32.partialorder %v138_v32, 0.0  ;;  %v189_v37 = vsel %vm173_vm11, %v135_v33, 1.0  ;;  %vm1846_vm11 = vcmask 1045509  }
  0xe5   :  { %v190_v36 = vsel %vm174_vm10, %v138_v32, 1.0  ;;  %vm1844_vm10 = vcmask 1044484  }
  0xe6   :  { %2236 = vrcp.f32 %v190_v36  ;;  %v141_v44 = vpop.xlane.xlu0 %140 }
  0xe7   :  { %2238 = vrcp.f32 %v189_v37  ;;  %v144_v43 = vpop.xlane.xlu1 %143  ;;  %vm175_vm13 = vcmp.gt.f32.partialorder %v141_v44, 0.0  ;;  %v2229_v47 = vpop.eup %2228 }
  0xe8   :  { %vm176_vm12 = vcmp.gt.f32.partialorder %v144_v43, 0.0  ;;  %v191_v46 = vsel %vm175_vm13, %v141_v44, 1.0  ;;  %v2231_v52 = vpop.eup %2230  ;;  %vm1850_vm13 = vcmask 1047559  }
  0xe9   :  { %v192_v45 = vsel %vm176_vm12, %v144_v43, 1.0  ;;  %v2715_v43 = vld [vmem:[#allocation5 + $0x18] sm:$0xff]   ;;  %vm1848_vm12 = vcmask 1046534  }
  0xea   :  { %2240 = vrcp.f32 %v192_v45  ;;  %v147_v56 = vpop.xlane.xlu0 %146 }
  0xeb   :  { %2242 = vrcp.f32 %v191_v46  ;;  %v150_v55 = vpop.xlane.xlu1 %149  ;;  %v2233_v57 = vpop.eup %2232  ;;  %vm177_vm15 = vcmp.gt.f32.partialorder %v147_v56, 0.0 }
  0xec   :  { %vm178_vm14 = vcmp.gt.f32.partialorder %v150_v55, 0.0  ;;  %v2235_v58 = vpop.eup %2234  ;;  %v217_v59 = vpack.c.bf16 %v2233_v57, %v2229_v47  ;;  %v193_v61 = vsel %vm177_vm15, %v147_v56, 1.0 }
  0xed   :  { %v194_v60 = vsel %vm178_vm14, %v150_v55, 1.0  ;;  %v218_v62 = vpack.c.bf16 %v2235_v58, %v2231_v52 }
  0xee   :  { %2244 = vrcp.f32 %v194_v60  ;;  %v239_v63 = vrot.slane %v217_v59, %v2687_v53  ;;  %v246_v3 = vrot.slane %v217_v59, %v2689_v54  ;;  %v153_v51 = vpop.xlane.xlu0 %152 }
  0xef   :  { %2246 = vrcp.f32 %v193_v61  ;;  %v156_v4 = vpop.xlane.xlu1 %155  ;;  %vm179_vm3 = vcmp.gt.f32.partialorder %v153_v51, 0.0  ;;  %v253_v19 = vrot.slane %v218_v62, %v2687_v53  ;;  %v260_v20 = vrot.slane %v218_v62, %v2689_v54  ;;  %v2735_v61 = vld [vmem:[#allocation5 + $0x30] sm:$0xff]  }
  0xf0   :  { %v2237_v7 = vpop.eup %2236  ;;  %vm180_vm2 = vcmp.gt.f32.partialorder %v156_v4, 0.0  ;;  %v361_v11 = vmul.bf16 %v239_v63, %v2541_v0  ;;  %v362_v12 = vmul.bf16 %v246_v3, %v2545_v2  ;;  %v195_v14 = vsel %vm179_vm3, %v153_v51, 1.0 }
  0xf1   :  { %v2239_v10 = vpop.eup %2238  ;;  %v196_v13 = vsel %vm180_vm2, %v156_v4, 1.0  ;;  %v363_v36 = vmul.bf16 %v253_v19, %v2543_v1  ;;  %v364_v37 = vmul.bf16 %v260_v20, %v2550_v6  ;;  %v2743_v4 = vld [vmem:[#allocation5 + $0x28] sm:$0xff]  }
  0xf2   :  { %v219_v15 = vpack.c.bf16 %v2237_v7, %v2239_v10  ;;  %2248 = vrcp.f32 %v196_v13  ;;  %v2699_v21 = vcombine.low %v361_v11, %v362_v12  ;;  %v159_v24 = vpop.xlane.xlu0 %158 }
  0xf3   :  { %2250 = vrcp.f32 %v195_v14  ;;  %v162_v22 = vpop.xlane.xlu1 %161  ;;  %vm181_vm5 = vcmp.gt.f32.partialorder %v159_v24, 0.0 }
  0xf4   :  { %v2241_v25 = vpop.eup %2240  ;;  %vm182_vm4 = vcmp.gt.f32.partialorder %v162_v22, 0.0  ;;  %v267_v0 = vrot.slane %v219_v15, %v2687_v53  ;;  %2056 = vmatmul.mubr.msk.bf16.vlgmr.msra.gmra.mrb[0].mxu1 %vm120_vm0, %v2699_v21  ;;  %v197_v27 = vsel %vm181_vm5, %v159_v24, 1.0  ;;  %v274_v30 = vrot.slane %v219_v15, %v2689_v54 }
  0xf5   :  { %v2243_v26 = vpop.eup %2242  ;;  %v198_v2 = vsel %vm182_vm4, %v162_v22, 1.0  ;;  %2060 = vmatpush3.bf16.msra.mxu1 %v2693_v5  ;;  %2061 = vmatprep.mubr.msk.bf16.mxu1 %vm2417_vm1, %v2416_v49 }
  0xf6   :  { %v220_v32 = vpack.c.bf16 %v2241_v25, %v2243_v26  ;;  %2252 = vrcp.f32 %v198_v2  ;;  %v365_v33 = vmul.bf16 %v267_v0, %v2555_v9  ;;  %v366_v38 = vmul.bf16 %v274_v30, %v2553_v8  ;;  %v165_v42 = vpop.xlane.xlu0 %164  ;;  %2071 = vmatprep.subr.bf16.mxu1 %v2416_v49  ;;  %v2768_v25 = vld [vmem:[#allocation5 + $0x38] sm:$0xff]  }
  0xf7   :  { %2254 = vrcp.f32 %v197_v27  ;;  %v168_v39 = vpop.xlane.xlu1 %167  ;;  %vm183_vm7 = vcmp.gt.f32.partialorder %v165_v42, 0.0  ;;  %v2721_v8 = vcombine.low %v363_v36, %v364_v37 }
  0xf8   :  { %v2245_v44 = vpop.eup %2244  ;;  %v281_v45 = vrot.slane %v220_v32, %v2687_v53  ;;  %vm184_vm6 = vcmp.gt.f32.partialorder %v168_v39, 0.0  ;;  %v288_v9 = vrot.slane %v220_v32, %v2689_v54  ;;  %v2719_v47 = vcombine.low %v365_v33, %v366_v38 }
  0xf9   :  { %v2247_v46 = vpop.eup %2246  ;;  %v200_v1 = vsel %vm184_vm6, %v168_v39, 1.0  ;;  %v199_v6 = vsel %vm183_vm7, %v165_v42, 1.0 }
  0xfa   :  { %v221_v52 = vpack.c.bf16 %v2245_v44, %v2247_v46  ;;  %2256 = vrcp.f32 %v200_v1  ;;  %2068 = vmatmul.mubr.msk.bf16.vlgmr.msra.gmra.mrb[0].mxu0 %vm120_vm0, %v2719_v47  ;;  %v367_v59 = vmul.bf16 %v281_v45, %v2565_v17  ;;  %v368_v60 = vmul.bf16 %v288_v9, %v2563_v16 }
  0xfb   :  { %2258 = vrcp.f32 %v199_v6  ;;  %2078 = vmatpush3.bf16.msra.mxu0 %v2705_v31  ;;  %2079 = vmatprep.mubr.msk.bf16.mxu0 %vm2417_vm1, %v2416_v49  ;;  %v569_v1 = vunpack.c.l.bf16 %v2605_v48  ;;  %v570_v6 = vunpack.c.h.bf16 %v2605_v48  ;;  %v571_v48 = vunpack.c.l.bf16 %v2693_v5 }
  0xfc   :  { %v2249_v55 = vpop.eup %2248  ;;  %v295_v56 = vrot.slane %v221_v52, %v2687_v53  ;;  %v302_v57 = vrot.slane %v221_v52, %v2689_v54  ;;  %2062 = vmatmul.mubr.msk.bf16.vlgmr.msra.gmra.mrb[4].mxu1 %vm120_vm0, %v2721_v8  ;;  %2089 = vmatprep.subr.bf16.mxu0 %v2416_v49  ;;  %v2749_v11 = vcombine.low %v367_v59, %v368_v60 }
  0xfd   :  { %v2251_v58 = vpop.eup %2250  ;;  %2072 = vmatpush3.bf16.msra.mxu1 %v2715_v43  ;;  %2073 = vmatprep.mubr.msk.bf16.mxu1 %vm2417_vm1, %v2416_v49 }
  0xfe   :  { %v222_v62 = vpack.c.bf16 %v2249_v55, %v2251_v58  ;;  %v369_v63 = vmul.bf16 %v295_v56, %v2573_v23  ;;  %v370_v3 = vmul.bf16 %v302_v57, %v2567_v18  ;;  %2083 = vmatprep.subr.bf16.mxu1 %v2416_v49 }
 0x100   :  { %v2253_v17 = vpop.eup %2252  ;;  %v2745_v16 = vcombine.low %v369_v63, %v370_v3  ;;  %v309_v7 = vrot.slane %v222_v62, %v2687_v53  ;;  %v316_v10 = vrot.slane %v222_v62, %v2689_v54 }
 0x101   :  { %v2255_v51 = vpop.eup %2254 }
 0x102   :  { %v223_v12 = vpack.c.bf16 %v2253_v17, %v2255_v51  ;;  %2080 = vmatmul.mubr.msk.bf16.vlgmr.msra.gmra.mrb[4].mxu0 %vm120_vm0, %v2745_v16  ;;  %v371_v15 = vmul.bf16 %v309_v7, %v2581_v29  ;;  %v372_v19 = vmul.bf16 %v316_v10, %v2579_v28  ;;  %v573_v10 = vunpack.c.l.bf16 %v2615_v50 }
 0x103   :  { %2090 = vmatpush3.bf16.msra.mxu0 %v2735_v61  ;;  %2091 = vmatprep.mubr.msk.bf16.mxu0 %vm2417_vm1, %v2416_v49 }
 0x104   :  { %v2257_v23 = vpop.eup %2256  ;;  %v323_v18 = vrot.slane %v223_v12, %v2687_v53  ;;  %v330_v13 = vrot.slane %v223_v12, %v2689_v54  ;;  %2074 = vmatmul.mubr.msk.bf16.vlgmr.msra.gmra.mrb[8].mxu1 %vm120_vm0, %v2749_v11  ;;  %v2774_v26 = vcombine.low %v371_v15, %v372_v19 }
 0x105   :  { %v2259_v14 = vpop.eup %2258  ;;  %2084 = vmatpush3.bf16.msra.mxu1 %v2743_v4  ;;  %2085 = vmatprep.mubr.msk.bf16.mxu1 %vm2417_vm1, %v2416_v49 }
 0x106   :  { %v224_v20 = vpack.c.bf16 %v2257_v23, %v2259_v14  ;;  %v373_v22 = vmul.bf16 %v323_v18, %v2589_v35  ;;  %v374_v24 = vmul.bf16 %v330_v13, %v2587_v34  ;;  %2095 = vmatprep.subr.bf16.mxu1 %v2416_v49  ;;  %v574_v13 = vunpack.c.h.bf16 %v2615_v50 }
 0x108   :  { %v2770_v0 = vcombine.low %v373_v22, %v374_v24  ;;  %v337_v29 = vrot.slane %v224_v20, %v2687_v53  ;;  %v344_v28 = vrot.slane %v224_v20, %v2689_v54  ;;  %v2215_v54 = vld [vmem:[#allocation7] sm:$0xff]  }
 0x109   :  { %2101 = vmatprep.subr.bf16.mxu0 %v2215_v54 }
 0x10a   :  { %2092 = vmatmul.mubr.msk.bf16.vlgmr.msra.gmra.mrb[8].mxu0 %vm120_vm0, %v2770_v0  ;;  %v375_v34 = vmul.bf16 %v337_v29, %v2597_v41  ;;  %v376_v35 = vmul.bf16 %v344_v28, %v2595_v40  ;;  %v478_v40 = vpop.xlane.xlu1 %477  ;;  %v475_v41 = vpop.xlane.xlu0 %474  ;;  %v572_v29 = vunpack.c.h.bf16 %v2693_v5 }
 0x10b   :  { %2102 = vmatpush3.bf16.msra.mxu0 %v2215_v54  ;;  %v521_v33 = vadd.f32 1.0, %v475_v41  ;;  %v522_v36 = vadd.f32 1.0, %v478_v40 }
 0x10c   :  { %2086 = vmatmul.mubr.msk.bf16.vlgmr.msra.gmra.mrb[12].mxu1 %vm120_vm0, %v2774_v26  ;;  %v2786_v53 = vcombine.low %v375_v34, %v376_v35  ;;  %2143 = vmatprep.subr.bf16.mxu0 %v2416_v49 }
 0x10d   :  { %2096 = vmatpush3.bf16.msra.mxu1 %v2768_v25  ;;  %2097 = vmatprep.mubr.msk.bf16.mxu1 %vm2417_vm1, %v2416_v49  ;;  %2260 = vrcp.f32 %v521_v33 }
 0x10e   :  { %2119 = vmatprep.subr.bf16.mxu1 %v2416_v49  ;;  %v484_v2 = vpop.xlane.xlu1 %483  ;;  %v481_v27 = vpop.xlane.xlu0 %480  ;;  %2262 = vrcp.f32 %v522_v36 }
 0x10f   :  { %v524_v45 = vadd.f32 1.0, %v484_v2  ;;  %v523_v9 = vadd.f32 1.0, %v481_v27 }
 0x112   :  { %v490_v30 = vpop.xlane.xlu1 %489  ;;  %v487_v32 = vpop.xlane.xlu0 %486 }
 0x113   :  { %v525_v39 = vadd.f32 1.0, %v487_v32  ;;  %v526_v42 = vadd.f32 1.0, %v490_v30 }
 0x114   :  { %2098 = vmatmul.mubr.msk.bf16.vlgmr.msra.gmra.mrb[16].mxu1 %vm120_vm0, %v2786_v53 }
 0x115   :  { %2121 = vmatprep.mubr.msk.bf16.mxu1 %vm2417_vm1, %v2416_v49  ;;  %2264 = vrcp.f32 %v525_v39 }
 0x116   :  { %v496_v37 = vpop.xlane.xlu1 %495  ;;  %v493_v38 = vpop.xlane.xlu0 %492  ;;  %2266 = vrcp.f32 %v526_v42 }
 0x117   :  { %2268 = vrcp.f32 %v524_v45  ;;  %v2795_v57 = vpop.eup %2260  ;;  %v527_v60 = vadd.f32 1.0, %v493_v38  ;;  %v528_v12 = vadd.f32 1.0, %v496_v37 }
 0x118   :  { %2270 = vrcp.f32 %v523_v9  ;;  %v2797_v63 = vpop.eup %2262 }
 0x11a   :  { %v502_v44 = vpop.xlane.xlu1 %501  ;;  %v499_v46 = vpop.xlane.xlu0 %498 }
 0x11b   :  { %v529_v55 = vadd.f32 1.0, %v499_v46  ;;  %v530_v17 = vadd.f32 1.0, %v502_v44  ;;  %v577_v44 = vunpack.c.l.bf16 %v2705_v31  ;;  %v575_v46 = vunpack.c.l.bf16 %v2715_v43 }
 0x11d   :  { %2272 = vrcp.f32 %v529_v55 }
 0x11e   :  { %v508_v56 = vpop.xlane.xlu1 %507  ;;  %v505_v62 = vpop.xlane.xlu0 %504  ;;  %2274 = vrcp.f32 %v527_v60 }
 0x11f   :  { %v2804_v14 = vpop.eup %2264  ;;  %2276 = vrcp.f32 %v530_v17  ;;  %v531_v28 = vadd.f32 1.0, %v505_v62  ;;  %v532_v45 = vadd.f32 1.0, %v508_v56  ;;  %v576_v17 = vunpack.c.h.bf16 %v2715_v43 }
 0x120   :  { %v2807_v35 = vpop.eup %2266  ;;  %2278 = vrcp.f32 %v528_v12 }
 0x121   :  { %v2809_v2 = vpop.eup %2268  ;;  %2280 = vrcp.f32 %v531_v28  ;;  %v581_v28 = vunpack.c.l.bf16 %v2735_v61 }
 0x122   :  { %v514_v19 = vpop.xlane.xlu1 %513  ;;  %v511_v34 = vpop.xlane.xlu0 %510 }
 0x123   :  { %v533_v41 = vadd.f32 1.0, %v511_v34  ;;  %v2813_v36 = vpop.eup %2270  ;;  %v534_v37 = vadd.f32 1.0, %v514_v19 }
 0x125   :  { %2282 = vrcp.f32 %v533_v41 }
 0x126   :  { %2284 = vrcp.f32 %v534_v37 }
 0x127   :  { %v2821_v55 = vpop.eup %2272  ;;  %2286 = vrcp.f32 %v532_v45 }
 0x128   :  { %v2823_v60 = vpop.eup %2274 }
 0x1c7   :  { %v633_v52 = vpop.f32.mrb[0].mxu1 }
 0x1c8   :  { %v634_v58 = vadd.f32 %v633_v52, %v569_v1  ;;  %v2057_v59 = vpop.f32.mrb[1].mxu1  ;;  %v578_v52 = vunpack.c.h.bf16 %v2705_v31 }
 0x1c9   :  { %v636_v3 = vpop.f32.mrb[2].mxu1  ;;  %v520_v59 = vpop.xlane.xlu1 %519 }
 0x1ca   :  { %v637_v51 = vadd.f32 %v636_v3, %v570_v6  ;;  %v2058_v7 = vpop.f32.mrb[3].mxu1  ;;  %v1025_v23 = vmul.f32 %v2795_v57, %v634_v58  ;;  %v536_v34 = vadd.f32 1.0, %v520_v59 }
 0x1cb   :  { %v2826_v7 = vpop.eup %2276 }
 0x1cc   :  { %v1026_v18 = vmul.f32 %v2797_v63, %v637_v51  ;;  %v517_v51 = vpop.xlane.xlu0 %516 }
 0x1cd   :  { %v743_v15 = vpop.f32.mrb[0].mxu0  ;;  %v535_v43 = vadd.f32 1.0, %v517_v51 }
 0x1ce   :  { %v1041_v20 = vpack.c.bf16 %v1026_v18, %v1025_v23  ;;  %v744_v22 = vadd.f32 %v743_v15, %v573_v10  ;;  %v2069_v24 = vpop.f32.mrb[1].mxu0  ;;  %v2830_v15 = vpop.eup %2278 }
 0x1cf   :  { %v688_v54 = vpop.f32.mrb[4].mxu1  ;;  %v746_v40 = vpop.f32.mrb[2].mxu0  ;;  %2288 = vrcp.f32 %v535_v43 }
 0x1d0   :  { %v689_v50 = vadd.f32 %v688_v54, %v571_v48  ;;  %v1029_v27 = vmul.f32 %v2804_v14, %v744_v22  ;;  %v2063_v30 = vpop.f32.mrb[5].mxu1  ;;  %2103 = vmatprep.mubr.msk.bf16.mxu0 %vm120_vm0, %v1041_v20  ;;  %v747_v32 = vadd.f32 %v746_v40, %v574_v13  ;;  %v2070_v33 = vpop.f32.mrb[3].mxu0  ;;  %2290 = vrcp.f32 %v536_v34 }
 0x1d1   :  { %v691_v5 = vpop.f32.mrb[6].mxu1  ;;  %v2836_v54 = vpop.eup %2280 }
 0x1d2   :  { %v692_v38 = vadd.f32 %v691_v5, %v572_v29  ;;  %v1030_v39 = vmul.f32 %v2807_v35, %v747_v32  ;;  %v2064_v42 = vpop.f32.mrb[7].mxu1  ;;  %v1027_v9 = vmul.f32 %v2813_v36, %v689_v50  ;;  %v579_v50 = vunpack.c.l.bf16 %v2743_v4  ;;  %v2841_v30 = vpop.eup %2282 }
 0x1d3   :  { %v580_v5 = vunpack.c.h.bf16 %v2743_v4 }
 0x1d4   :  { %v1028_v1 = vmul.f32 %v2809_v2, %v692_v38  ;;  %v1043_v6 = vpack.c.bf16 %v1030_v39, %v1029_v27  ;;  %v582_v27 = vunpack.c.h.bf16 %v2735_v61  ;;  %v2844_v39 = vpop.eup %2284 }
 0x1d5   :  { %v853_v58 = vpop.f32.mrb[4].mxu0 }
 0x1d6   :  { %v1042_v62 = vpack.c.bf16 %v1028_v1, %v1027_v9  ;;  %v854_v3 = vadd.f32 %v853_v58, %v577_v44  ;;  %v2081_v56 = vpop.f32.mrb[5].mxu0 }
 0x1d7   :  { %v798_v10 = vpop.f32.mrb[8].mxu1  ;;  %v856_v12 = vpop.f32.mrb[6].mxu0  ;;  %v583_v56 = vunpack.c.l.bf16 %v2768_v25 }
 0x1d8   :  { %v799_v48 = vadd.f32 %v798_v10, %v575_v46  ;;  %v1033_v31 = vmul.f32 %v2821_v55, %v854_v3  ;;  %v2075_v23 = vpop.f32.mrb[9].mxu1  ;;  %2104 = vmatmul.mubr.msk.bf16.vlgmr.msra.gmra.mrb[12].mxu0 %vm120_vm0, %v1042_v62  ;;  %v857_v18 = vadd.f32 %v856_v12, %v578_v52  ;;  %v2082_v13 = vpop.f32.mrb[7].mxu0  ;;  %v584_v10 = vunpack.c.h.bf16 %v2768_v25  ;;  %v2870_v25 = vld [vmem:[%s3124_s3] ss:$0 sm:$0xff] }
 0x1d9   :  { %v801_v19 = vpop.f32.mrb[10].mxu1  ;;  %2107 = vmatprep.mubr.msk.bf16.mxu0 %vm120_vm0, %v1043_v6  ;;  %v2848_v6 = vpop.eup %2286 }
 0x1da   :  { %v1031_v20 = vmul.f32 %v2823_v60, %v799_v48  ;;  %v802_v22 = vadd.f32 %v801_v19, %v576_v17  ;;  %v1034_v24 = vmul.f32 %v2826_v7, %v857_v18  ;;  %v2076_v29 = vpop.f32.mrb[11].mxu1  ;;  %v2856_v12 = vpop.eup %2288 }
 0x1db   :  { %v2859_v18 = vpop.eup %2290 }
 0x1dc   :  { %v1032_v40 = vmul.f32 %v2830_v15, %v802_v22  ;;  %v1045_v41 = vpack.c.bf16 %v1034_v24, %v1033_v31 }
 0x1dd   :  { %v963_v32 = vpop.f32.mrb[8].mxu0 }
 0x1de   :  { %v1044_v33 = vpack.c.bf16 %v1032_v40, %v1031_v20  ;;  %v964_v37 = vadd.f32 %v963_v32, %v581_v28  ;;  %v2093_v38 = vpop.f32.mrb[9].mxu0 }
 0x1df   :  { %v908_v42 = vpop.f32.mrb[12].mxu1  ;;  %v966_v44 = vpop.f32.mrb[10].mxu0 }
 0x1e0   :  { %v909_v45 = vadd.f32 %v908_v42, %v579_v50  ;;  %v2087_v46 = vpop.f32.mrb[13].mxu1  ;;  %2108 = vmatmul.mubr.msk.bf16.gmra.mrb[16].mxu0 %vm120_vm0, %v1044_v33  ;;  %v1037_v61 = vmul.f32 %v2841_v30, %v964_v37  ;;  %v967_v9 = vadd.f32 %v966_v44, %v582_v27  ;;  %v2094_v1 = vpop.f32.mrb[11].mxu0 }
 0x1e1   :  { %v911_v52 = vpop.f32.mrb[14].mxu1  ;;  %2111 = vmatprep.mubr.msk.bf16.mxu0 %vm120_vm0, %v1045_v41 }
 0x1e2   :  { %v1035_v4 = vmul.f32 %v2836_v54, %v909_v45  ;;  %v912_v58 = vadd.f32 %v911_v52, %v580_v5  ;;  %v2088_v59 = vpop.f32.mrb[15].mxu1  ;;  %v1038_v62 = vmul.f32 %v2844_v39, %v967_v9 }
 0x1e4   :  { %v1036_v3 = vmul.f32 %v2848_v6, %v912_v58  ;;  %v1047_v17 = vpack.c.bf16 %v1038_v62, %v1037_v61 }
 0x1e6   :  { %v1046_v51 = vpack.c.bf16 %v1036_v3, %v1035_v4 }
 0x1e7   :  { %v1018_v48 = vpop.f32.mrb[16].mxu1 }
 0x1e8   :  { %v1019_v31 = vadd.f32 %v1018_v48, %v583_v56  ;;  %v2099_v23 = vpop.f32.mrb[17].mxu1  ;;  %2112 = vmatmul.mubr.msk.bf16.gmra.mrb[20].mxu0 %vm120_vm0, %v1046_v51 }
 0x1e9   :  { %v1021_v13 = vpop.f32.mrb[18].mxu1  ;;  %2115 = vmatprep.mubr.msk.bf16.mxu0 %vm120_vm0, %v1047_v17 }
 0x1ea   :  { %v1039_v19 = vmul.f32 %v2856_v12, %v1019_v31  ;;  %v1022_v43 = vadd.f32 %v1021_v13, %v584_v10  ;;  %v2100_v20 = vpop.f32.mrb[19].mxu1 }
 0x1ec   :  { %v1040_v22 = vmul.f32 %v2859_v18, %v1022_v43 }
 0x1ee   :  { %v1048_v24 = vpack.c.bf16 %v1040_v22, %v1039_v19 }
 0x1f0   :  { %2116 = vmatmul.mubr.msk.bf16.gmra.mrb[24].mxu0 %vm120_vm0, %v1048_v24 }
 0x1f1   :  { %2145 = vmatprep.mubr.msk.bf16.mxu0 %vm2417_vm1, %v2416_v49 }
 0x2ab   :  { %v2105_v29 = vpop.f32.mrb[12].mxu0 }
 0x2ac   :  { %v1122_v28 = vpop.f32.mrb[13].mxu0  ;;  %v2882_v32 = vadd.f32 %v2105_v29, %v2870_v25 }
 0x2ad   :  { %v2873_v34 = vadd.f32 %v2870_v25, %v1122_v28  ;;  %v2106_v40 = vpop.f32.mrb[14].mxu0 }
 0x2ae   :  { %v1125_v41 = vpop.f32.mrb[15].mxu0  ;;  %v2876_v50 = vadd.f32 %v2106_v40, %v2870_v25  ;;  %v1187_v45 = vmax.f32 %v2882_v32, 0.0 }
 0x2af   :  { %v2879_v27 = vadd.f32 %v2870_v25, %v1125_v41  ;;  %v1185_v33 = vmax.f32 %v2873_v34, 0.0 }
 0x2b0   :  { %v1188_v37 = vmax.f32 %v2876_v50, 0.0 }
 0x2b1   :  { %v1186_v5 = vmax.f32 %v2879_v27, 0.0 }
 0x2b2   :  { %v1202_v1 = vpack.c.bf16 %v1188_v37, %v1187_v45 }
 0x2b3   :  { %v1201_v38 = vpack.c.bf16 %v1186_v5, %v1185_v33  ;;  %v2109_v42 = vpop.f32.mrb[16].mxu0 }
 0x2b4   :  { %v1138_v44 = vpop.f32.mrb[17].mxu0  ;;  %v2918_v17 = vadd.f32 %v2109_v42, %v2870_v25 }
 0x2b5   :  { %v2893_v46 = vadd.f32 %v2870_v25, %v1138_v44  ;;  %v2110_v61 = vpop.f32.mrb[18].mxu0  ;;  %2120 = vmatpush3.bf16.msra.mxu1 %v1201_v38 }
 0x2b6   :  { %v1141_v9 = vpop.f32.mrb[19].mxu0  ;;  %2125 = vmatprep.subr.bf16.mxu1 %v2416_v49  ;;  %v2921_v51 = vadd.f32 %v2110_v61, %v2870_v25  ;;  %v1191_v13 = vmax.f32 %v2918_v17, 0.0 }
 0x2b7   :  { %v2901_v52 = vadd.f32 %v2870_v25, %v1141_v9  ;;  %v1189_v4 = vmax.f32 %v2893_v46, 0.0 }
 0x2b8   :  { %2122 = vmatmul.mubr.msk.bf16.vlgmr.msra.gmra.mrb[20].mxu1 %vm120_vm0, %v2699_v21  ;;  %v1192_v19 = vmax.f32 %v2921_v51, 0.0 }
 0x2b9   :  { %v1190_v58 = vmax.f32 %v2901_v52, 0.0  ;;  %2126 = vmatpush3.bf16.msra.mxu1 %v1202_v1  ;;  %2127 = vmatprep.mubr.msk.bf16.mxu1 %vm2417_vm1, %v2416_v49 }
 0x2ba   :  { %2131 = vmatprep.subr.bf16.mxu1 %v2416_v49  ;;  %v1204_v29 = vpack.c.bf16 %v1192_v19, %v1191_v13 }
 0x2bb   :  { %v2113_v59 = vpop.f32.mrb[20].mxu0  ;;  %v1203_v3 = vpack.c.bf16 %v1190_v58, %v1189_v4 }
 0x2bc   :  { %v1154_v62 = vpop.f32.mrb[21].mxu0  ;;  %v2948_v40 = vadd.f32 %v2113_v59, %v2870_v25 }
 0x2bd   :  { %v2915_v56 = vadd.f32 %v2870_v25, %v1154_v62  ;;  %v2114_v21 = vpop.f32.mrb[22].mxu0 }
 0x2be   :  { %v1157_v10 = vpop.f32.mrb[23].mxu0  ;;  %v2951_v41 = vadd.f32 %v2114_v21, %v2870_v25  ;;  %v1195_v61 = vmax.f32 %v2948_v40, 0.0 }
 0x2bf   :  { %v1193_v48 = vmax.f32 %v2915_v56, 0.0  ;;  %v2925_v31 = vadd.f32 %v2870_v25, %v1157_v10 }
 0x2c0   :  { %2128 = vmatmul.mubr.msk.bf16.vlgmr.msra.gmra.mrb[24].mxu1 %vm120_vm0, %v2721_v8  ;;  %v1196_v9 = vmax.f32 %v2951_v41, 0.0 }
 0x2c1   :  { %v1194_v23 = vmax.f32 %v2925_v31, 0.0  ;;  %2132 = vmatpush3.bf16.msra.mxu1 %v1203_v3  ;;  %2133 = vmatprep.mubr.msk.bf16.mxu1 %vm2417_vm1, %v2416_v49 }
 0x2c2   :  { %2137 = vmatprep.subr.bf16.mxu1 %v2416_v49 }
 0x2c3   :  { %v1205_v43 = vpack.c.bf16 %v1194_v23, %v1193_v48  ;;  %v2117_v20 = vpop.f32.mrb[24].mxu0 }
 0x2c4   :  { %v1170_v22 = vpop.f32.mrb[25].mxu0  ;;  %v2978_v1 = vadd.f32 %v2117_v20, %v2870_v25 }
 0x2c5   :  { %v2940_v8 = vadd.f32 %v2870_v25, %v1170_v22  ;;  %v2118_v24 = vpop.f32.mrb[26].mxu0  ;;  %2144 = vmatpush3.bf16.msra.mxu0 %v1205_v43 }
 0x2c6   :  { %v1173_v28 = vpop.f32.mrb[27].mxu0  ;;  %2155 = vmatprep.subr.bf16.mxu0 %v2416_v49  ;;  %v2981_v59 = vadd.f32 %v2118_v24, %v2870_v25  ;;  %v1199_v62 = vmax.f32 %v2978_v1, 0.0  ;;  %v2218_v1 = vld [vmem:[%s3127_s6] sm:$0xff]  }
 0x2c7   :  { %v1197_v38 = vmax.f32 %v2940_v8, 0.0  ;;  %v2955_v42 = vadd.f32 %v2870_v25, %v1173_v28 }
 0x2c8   :  { %2134 = vmatmul.mubr.msk.bf16.vlgmr.msra.gmra.mrb[28].mxu1 %vm120_vm0, %v2719_v47  ;;  %2146 = vmatmul.mubr.msk.bf16.vlgmr.msra.gmra.mrb[28].mxu0 %vm120_vm0, %v2745_v16  ;;  %v1206_v16 = vpack.c.bf16 %v1196_v9, %v1195_v61  ;;  %v1200_v3 = vmax.f32 %v2981_v59, 0.0 }
 0x2c9   :  { %v1198_v44 = vmax.f32 %v2955_v42, 0.0  ;;  %2138 = vmatpush3.bf16.msra.mxu1 %v1204_v29  ;;  %2139 = vmatprep.mubr.msk.bf16.mxu1 %vm2417_vm1, %v2416_v49 }
 0x2ca   :  { %2149 = vmatprep.subr.bf16.mxu1 %v2416_v49  ;;  %2157 = vmatprep.mubr.msk.bf16.mxu0 %vm2417_vm1, %v2416_v49  ;;  %v1208_v25 = vpack.c.bf16 %v1200_v3, %v1199_v62 }
 0x2cb   :  { %v1207_v47 = vpack.c.bf16 %v1198_v44, %v1197_v38 }
 0x2cd   :  { %2156 = vmatpush3.bf16.msra.mxu0 %v1207_v47 }
 0x2d0   :  { %2140 = vmatmul.mubr.msk.bf16.vlgmr.msra.gmra.mrb[32].mxu1 %vm120_vm0, %v2749_v11  ;;  %2158 = vmatmul.mubr.msk.bf16.vlgmr.msra.gmra.mrb[32].mxu0 %vm120_vm0, %v2770_v0  ;;  %v2216_v11 = vld [vmem:[#allocation8] sm:$0xff]   ;;  %v2217_v0 = vld [vmem:[#allocation8 + $0x8] sm:$0xff]  }
 0x2d1   :  { %2150 = vmatpush3.bf16.msra.mxu1 %v1206_v16  ;;  %2151 = vmatprep.mubr.msk.bf16.mxu1 %vm2417_vm1, %v2416_v49 }
 0x2d2   :  { %2161 = vmatprep.subr.bf16.mxu1 %v2416_v49  ;;  %2167 = vmatprep.subr.bf16.mxu0 %v2216_v11 }
 0x2d3   :  { %2168 = vmatpush3.bf16.msra.mxu0 %v2216_v11 }
 0x2d4   :  { %2169 = vmatprep.subr.bf16.mxu0 %v2217_v0 }
 0x2d7   :  { %2170 = vmatpush3.bf16.msra.mxu0 %v2217_v0 }
 0x2d8   :  { %2152 = vmatmul.mubr.msk.bf16.vlgmr.msra.gmra.mrb[36].mxu1 %vm120_vm0, %v2774_v26 }
 0x2d9   :  { %2162 = vmatpush3.bf16.msra.mxu1 %v1208_v25  ;;  %2163 = vmatprep.mubr.msk.bf16.mxu1 %vm2417_vm1, %v2416_v49 }
 0x2da   :  { %2187 = vmatprep.subr.bf16.mxu1 %v2416_v49 }
 0x2e0   :  { %2164 = vmatmul.mubr.msk.bf16.vlgmr.msra.gmra.mrb[40].mxu1 %vm120_vm0, %v2786_v53  ;;  %vm1584_vm0 = vcmask 261120  }
 0x2e1   :  { %2191 = vmatprep.mubr.msk.bf16.mxu1 %vm2417_vm1, %v2416_v49  ;;  %2188 = vmatpush3.bf16.msra.mxu1 %v2218_v1  ;;  %vm1838_vm1 = vcmask 1041409  }
 0x2e2   :  { %2189 = vmatprep.subr.bf16.mxu1 %v2416_v49 }
 0x38b   :  { %v1243_v21 = vpop.f32.mrb[20].mxu1 }
 0x38c   :  { %v1244_v26 = vadd.f32 %v1243_v21, %v1185_v33  ;;  %v2123_v10 = vpop.f32.mrb[21].mxu1 }
 0x38d   :  { %v1246_v43 = vpop.f32.mrb[22].mxu1 }
 0x38e   :  { %v1247_v20 = vadd.f32 %v1246_v43, %v1186_v5  ;;  %v2124_v22 = vpop.f32.mrb[23].mxu1  ;;  %v1537_v53 = vmul.f32 %v2795_v57, %v1244_v26 }
 0x390   :  { %v1538_v24 = vmul.f32 %v2797_v63, %v1247_v20 }
 0x392   :  { %v1553_v29 = vpack.c.bf16 %v1538_v24, %v1537_v53 }
 0x393   :  { %v1284_v28 = vpop.f32.mrb[24].mxu1 }
 0x394   :  { %v1285_v47 = vadd.f32 %v1284_v28, %v1187_v45  ;;  %v2129_v16 = vpop.f32.mrb[25].mxu1  ;;  %2171 = vmatprep.mubr.msk.bf16.mxu0 %vm1584_vm0, %v1553_v29 }
 0x395   :  { %v1287_v34 = vpop.f32.mrb[26].mxu1 }
 0x396   :  { %v1288_v33 = vadd.f32 %v1287_v34, %v1188_v37  ;;  %v2130_v27 = vpop.f32.mrb[27].mxu1  ;;  %v1539_v5 = vmul.f32 %v2813_v36, %v1285_v47 }
 0x398   :  { %v1540_v57 = vmul.f32 %v2809_v2, %v1288_v33 }
 0x39a   :  { %v1554_v25 = vpack.c.bf16 %v1540_v57, %v1539_v5 }
 0x39b   :  { %v1325_v63 = vpop.f32.mrb[28].mxu1  ;;  %v1407_v11 = vpop.f32.mrb[28].mxu0 }
 0x39c   :  { %v1326_v0 = vadd.f32 %v1325_v63, %v1189_v4  ;;  %v1408_v32 = vadd.f32 %v1407_v11, %v1193_v48  ;;  %v2135_v45 = vpop.f32.mrb[29].mxu1  ;;  %v2147_v21 = vpop.f32.mrb[29].mxu0  ;;  %2172 = vmatmul.mubr.msk.bf16.vlgmr.msra.gmra.mrb[36].mxu0 %vm1584_vm0, %v1554_v25 }
 0x39d   :  { %v1328_v50 = vpop.f32.mrb[30].mxu1  ;;  %v1410_v37 = vpop.f32.mrb[30].mxu0 }
 0x39e   :  { %v1329_v36 = vadd.f32 %v1328_v50, %v1190_v58  ;;  %v1411_v2 = vadd.f32 %v1410_v37, %v1194_v23  ;;  %v2136_v26 = vpop.f32.mrb[31].mxu1  ;;  %v2148_v10 = vpop.f32.mrb[31].mxu0  ;;  %v1541_v46 = vmul.f32 %v2804_v14, %v1326_v0  ;;  %v1545_v4 = vmul.f32 %v2821_v55, %v1408_v32 }
 0x3a0   :  { %v1542_v56 = vmul.f32 %v2807_v35, %v1329_v36  ;;  %v1546_v48 = vmul.f32 %v2826_v7, %v1411_v2 }
 0x3a2   :  { %v1555_v43 = vpack.c.bf16 %v1542_v56, %v1541_v46  ;;  %v1557_v20 = vpack.c.bf16 %v1546_v48, %v1545_v4 }
 0x3a3   :  { %v1366_v22 = vpop.f32.mrb[32].mxu1  ;;  %v1489_v53 = vpop.f32.mrb[32].mxu0 }
 0x3a4   :  { %v1367_v52 = vadd.f32 %v1366_v22, %v1191_v13  ;;  %v1490_v58 = vadd.f32 %v1489_v53, %v1197_v38  ;;  %v2141_v31 = vpop.f32.mrb[33].mxu1  ;;  %v2159_v23 = vpop.f32.mrb[33].mxu0  ;;  %2175 = vmatprep.mubr.msk.bf16.mxu0 %vm1584_vm0, %v1555_v43 }
 0x3a5   :  { %v1369_v14 = vpop.f32.mrb[34].mxu1  ;;  %v1492_v55 = vpop.f32.mrb[34].mxu0 }
 0x3a6   :  { %v1370_v35 = vadd.f32 %v1369_v14, %v1192_v19  ;;  %v1493_v7 = vadd.f32 %v1492_v55, %v1198_v44  ;;  %v2142_v24 = vpop.f32.mrb[35].mxu1  ;;  %v2160_v29 = vpop.f32.mrb[35].mxu0  ;;  %v1543_v17 = vmul.f32 %v2823_v60, %v1367_v52  ;;  %v1549_v13 = vmul.f32 %v2841_v30, %v1490_v58 }
 0x3a8   :  { %v1544_v8 = vmul.f32 %v2830_v15, %v1370_v35  ;;  %v1550_v38 = vmul.f32 %v2844_v39, %v1493_v7 }
 0x3aa   :  { %v1556_v28 = vpack.c.bf16 %v1544_v8, %v1543_v17  ;;  %v1559_v47 = vpack.c.bf16 %v1550_v38, %v1549_v13 }
 0x3ab   :  { %v1448_v16 = vpop.f32.mrb[36].mxu1 }
 0x3ac   :  { %v1449_v51 = vadd.f32 %v1448_v16, %v1195_v61  ;;  %v2153_v19 = vpop.f32.mrb[37].mxu1  ;;  %2176 = vmatmul.mubr.msk.bf16.gmra.mrb[40].mxu0 %vm1584_vm0, %v1556_v28 }
 0x3ad   :  { %v1451_v42 = vpop.f32.mrb[38].mxu1  ;;  %2179 = vmatprep.mubr.msk.bf16.mxu0 %vm1584_vm0, %v1557_v20 }
 0x3ae   :  { %v1452_v60 = vadd.f32 %v1451_v42, %v1196_v9  ;;  %v2154_v30 = vpop.f32.mrb[39].mxu1  ;;  %v1547_v15 = vmul.f32 %v2836_v54, %v1449_v51 }
 0x3b0   :  { %v1548_v39 = vmul.f32 %v2848_v6, %v1452_v60 }
 0x3b2   :  { %v1558_v44 = vpack.c.bf16 %v1548_v39, %v1547_v15 }
 0x3b3   :  { %v1530_v34 = vpop.f32.mrb[40].mxu1 }
 0x3b4   :  { %v1531_v40 = vadd.f32 %v1530_v34, %v1199_v62  ;;  %v2165_v61 = vpop.f32.mrb[41].mxu1  ;;  %2180 = vmatmul.mubr.msk.bf16.gmra.mrb[44].mxu0 %vm1584_vm0, %v1558_v44  ;;  %v2219_v62 = vld [vmem:[%s3127_s6 + $0x8] sm:$0xff]  }
 0x3b5   :  { %v1533_v33 = vpop.f32.mrb[42].mxu1  ;;  %2183 = vmatprep.mubr.msk.bf16.mxu0 %vm1584_vm0, %v1559_v47  ;;  %2190 = vmatpush3.bf16.msra.mxu1 %v2219_v62 }
 0x3b6   :  { %v1534_v41 = vadd.f32 %v1533_v33, %v1200_v3  ;;  %v2166_v9 = vpop.f32.mrb[43].mxu1  ;;  %v1551_v27 = vmul.f32 %v2856_v12, %v1531_v40  ;;  %v3071_v12 = vld [vmem:[%s3126_s5] ss:$0 sm:$0xff] }
 0x3b8   :  { %v1552_v54 = vmul.f32 %v2859_v18, %v1534_v41 }
 0x3ba   :  { %v1560_v6 = vpack.c.bf16 %v1552_v54, %v1551_v27 }
 0x3bc   :  { %2184 = vmatmul.mubr.msk.bf16.gmra.mrb[48].mxu0 %vm1584_vm0, %v1560_v6 }
 0x46f   :  { %v2173_v18 = vpop.f32.mrb[36].mxu0 }
 0x470   :  { %v1652_v59 = vadd.f32 %v2173_v18, %v3071_v12  ;;  %v1643_v3 = vpop.f32.mrb[37].mxu0 }
 0x471   :  { %v1644_v5 = vadd.f32 %v3071_v12, %v1643_v3  ;;  %v2174_v57 = vpop.f32.mrb[38].mxu0 }
 0x472   :  { %v1708_v25 = vmax.f32 %v1652_v59, 0.0  ;;  %v1655_v63 = vadd.f32 %v2174_v57, %v3071_v12  ;;  %v1646_v11 = vpop.f32.mrb[39].mxu0 }
 0x473   :  { %v1706_v0 = vmax.f32 %v1644_v5, 0.0  ;;  %v1647_v49 = vadd.f32 %v3071_v12, %v1646_v11 }
 0x474   :  { %v1709_v32 = vmax.f32 %v1655_v63, 0.0  ;;  %v1731_v21 = vsel %vm1584_vm0, %v1708_v25, 0.0 }
 0x475   :  { %v1707_v45 = vmax.f32 %v1647_v49, 0.0  ;;  %v1722_v37 = vsel %vm1584_vm0, %v1706_v0, 0.0 }
 0x476   :  { %v1732_v50 = vsel %vm1584_vm0, %v1709_v32, 0.0 }
 0x477   :  { %v1733_v36 = vadd.f32 %v1732_v50, %v1731_v21  ;;  %v1723_v2 = vsel %vm1584_vm0, %v1707_v45, 0.0 }
 0x478   :  { %v1724_v26 = vadd.f32 %v1723_v2, %v1722_v37 }
 0x479   :  { %v1734_v10 = vrot.slane %v1733_v36, 4 }
 0x47a   :  { %v1725_v46 = vrot.slane %v1724_v26, 4 }
 0x47b   :  { %v1735_v4 = vadd.f32 %v1734_v10, %v1733_v36 }
 0x47c   :  { %v1726_v56 = vadd.f32 %v1725_v46, %v1724_v26 }
 0x47d   :  { %v1736_v48 = vrot.slane %v1735_v4, 2 }
 0x47e   :  { %v1727_v43 = vrot.slane %v1726_v56, 2 }
 0x47f   :  { %v1737_v20 = vadd.f32 %v1736_v48, %v1735_v4  ;;  %v2177_v22 = vpop.f32.mrb[40].mxu0 }
 0x480   :  { %v1728_v53 = vadd.f32 %v1727_v43, %v1726_v56  ;;  %v1668_v52 = vadd.f32 %v2177_v22, %v3071_v12  ;;  %v1659_v58 = vpop.f32.mrb[41].mxu0 }
 0x481   :  { %v1738_v31 = vrot.slane %v1737_v20, 1  ;;  %v1660_v23 = vadd.f32 %v3071_v12, %v1659_v58  ;;  %v2178_v14 = vpop.f32.mrb[42].mxu0 }
 0x482   :  { %v1729_v55 = vrot.slane %v1728_v53, 1  ;;  %v1712_v35 = vmax.f32 %v1668_v52, 0.0  ;;  %v1671_v7 = vadd.f32 %v2178_v14, %v3071_v12  ;;  %v1662_v24 = vpop.f32.mrb[43].mxu0 }
 0x483   :  { %v1739_v29 = vadd.f32 %v1738_v31, %v1737_v20  ;;  %v1710_v17 = vmax.f32 %v1660_v23, 0.0  ;;  %v1663_v13 = vadd.f32 %v3071_v12, %v1662_v24 }
 0x484   :  { %v1730_v8 = vadd.f32 %v1729_v55, %v1728_v53  ;;  %v1713_v38 = vmax.f32 %v1671_v7, 0.0  ;;  %v1749_v51 = vsel %vm1584_vm0, %v1712_v35, 0.0 }
 0x485   :  { %v1796_v28 = vmul.f32 0.0625, %v1739_v29  ;;  %v1711_v47 = vmax.f32 %v1663_v13, 0.0  ;;  %v1740_v60 = vsel %vm1584_vm0, %v1710_v17, 0.0 }
 0x486   :  { %v1795_v16 = vmul.f32 0.0625, %v1730_v8  ;;  %v1750_v19 = vsel %vm1584_vm0, %v1713_v38, 0.0 }
 0x487   :  { %v1804_v42 = vpack.c.bf16 %v1796_v28, %v1796_v28  ;;  %v1751_v30 = vadd.f32 %v1750_v19, %v1749_v51  ;;  %v1741_v15 = vsel %vm1584_vm0, %v1711_v47, 0.0  ;;  %v2181_v39 = vpop.f32.mrb[44].mxu0 }
 0x488   :  { %v1803_v44 = vpack.c.bf16 %v1795_v16, %v1795_v16  ;;  %v1742_v34 = vadd.f32 %v1741_v15, %v1740_v60  ;;  %v1684_v40 = vadd.f32 %v2181_v39, %v3071_v12  ;;  %v1675_v61 = vpop.f32.mrb[45].mxu0 }
 0x489   :  { %v1831_v33 = vunpack.c.l.b16 %v1804_v42  ;;  %v1752_v41 = vrot.slane %v1751_v30, 4  ;;  %v1676_v9 = vadd.f32 %v3071_v12, %v1675_v61  ;;  %v2182_v27 = vpop.f32.mrb[46].mxu0 }
 0x48a   :  { %v1830_v54 = vunpack.c.l.b16 %v1803_v44  ;;  %v1743_v6 = vrot.slane %v1742_v34, 4  ;;  %v1716_v1 = vmax.f32 %v1684_v40, 0.0  ;;  %v1687_v62 = vadd.f32 %v2182_v27, %v3071_v12  ;;  %v1678_v18 = vpop.f32.mrb[47].mxu0 }
 0x48b   :  { %v1753_v59 = vadd.f32 %v1752_v41, %v1751_v30  ;;  %v1714_v3 = vmax.f32 %v1676_v9, 0.0  ;;  %v1679_v5 = vadd.f32 %v3071_v12, %v1678_v18 }
 0x48c   :  { %v1839_v57 = vsel %vm1838_vm1, %v1831_v33, %v1830_v54  ;;  %v1744_v25 = vadd.f32 %v1743_v6, %v1742_v34  ;;  %v1717_v63 = vmax.f32 %v1687_v62, 0.0  ;;  %v1767_v32 = vsel %vm1584_vm0, %v1716_v1, 0.0 }
 0x48d   :  { %v1754_v11 = vrot.slane %v1753_v59, 2  ;;  %v1715_v0 = vmax.f32 %v1679_v5, 0.0  ;;  %v1758_v50 = vsel %vm1584_vm0, %v1714_v3, 0.0 }
 0x48e   :  { %v1745_v49 = vrot.slane %v1744_v25, 2  ;;  %v1768_v45 = vsel %vm1584_vm0, %v1717_v63, 0.0 }
 0x48f   :  { %v1755_v21 = vadd.f32 %v1754_v11, %v1753_v59  ;;  %v1769_v37 = vadd.f32 %v1768_v45, %v1767_v32  ;;  %v1759_v36 = vsel %vm1584_vm0, %v1715_v0, 0.0  ;;  %v2185_v2 = vpop.f32.mrb[48].mxu0 }
 0x490   :  { %v1746_v26 = vadd.f32 %v1745_v49, %v1744_v25  ;;  %v1760_v10 = vadd.f32 %v1759_v36, %v1758_v50  ;;  %v1700_v46 = vadd.f32 %v2185_v2, %v3071_v12  ;;  %v1691_v4 = vpop.f32.mrb[49].mxu0 }
 0x491   :  { %v1756_v56 = vrot.slane %v1755_v21, 1  ;;  %v1770_v48 = vrot.slane %v1769_v37, 4  ;;  %v1692_v43 = vadd.f32 %v3071_v12, %v1691_v4  ;;  %v2186_v20 = vpop.f32.mrb[50].mxu0 }
 0x492   :  { %v1747_v22 = vrot.slane %v1746_v26, 1  ;;  %v1761_v53 = vrot.slane %v1760_v10, 4  ;;  %v1720_v52 = vmax.f32 %v1700_v46, 0.0  ;;  %v1703_v58 = vadd.f32 %v2186_v20, %v3071_v12  ;;  %v1694_v31 = vpop.f32.mrb[51].mxu0 }
 0x493   :  { %v1757_v23 = vadd.f32 %v1756_v56, %v1755_v21  ;;  %v1771_v14 = vadd.f32 %v1770_v48, %v1769_v37  ;;  %v1718_v55 = vmax.f32 %v1692_v43, 0.0  ;;  %v1695_v35 = vadd.f32 %v3071_v12, %v1694_v31 }
 0x494   :  { %v1748_v7 = vadd.f32 %v1747_v22, %v1746_v26  ;;  %v1762_v24 = vadd.f32 %v1761_v53, %v1760_v10  ;;  %v1721_v29 = vmax.f32 %v1703_v58, 0.0  ;;  %v1785_v8 = vsel %vm1584_vm0, %v1720_v52, 0.0  ;;  %v1995_v22 = vld [vmem:[%s3128_s7] ss:$0 sm:$0xff] }
 0x495   :  { %v1798_v17 = vmul.f32 0.0625, %v1757_v23  ;;  %v1772_v13 = vrot.slane %v1771_v14, 2  ;;  %v1719_v38 = vmax.f32 %v1695_v35, 0.0  ;;  %v1776_v16 = vsel %vm1584_vm0, %v1718_v55, 0.0 }
 0x496   :  { %v1797_v28 = vmul.f32 0.0625, %v1748_v7  ;;  %v1763_v47 = vrot.slane %v1762_v24, 2  ;;  %v1786_v51 = vsel %vm1584_vm0, %v1721_v29, 0.0 }
 0x497   :  { %v1806_v19 = vpack.c.bf16 %v1798_v17, %v1798_v17  ;;  %v1773_v42 = vadd.f32 %v1772_v13, %v1771_v14  ;;  %v1787_v60 = vadd.f32 %v1786_v51, %v1785_v8  ;;  %v1777_v30 = vsel %vm1584_vm0, %v1719_v38, 0.0 }
 0x498   :  { %v1805_v12 = vpack.c.bf16 %v1797_v28, %v1797_v28  ;;  %v1764_v15 = vadd.f32 %v1763_v47, %v1762_v24  ;;  %v1778_v39 = vadd.f32 %v1777_v30, %v1776_v16 }
 0x499   :  { %v1774_v44 = vrot.slane %v1773_v42, 1  ;;  %v1788_v34 = vrot.slane %v1787_v60, 4  ;;  %v1833_v41 = vunpack.c.l.b16 %v1806_v19 }
 0x49a   :  { %v1832_v40 = vunpack.c.l.b16 %v1805_v12  ;;  %v1765_v61 = vrot.slane %v1764_v15, 1  ;;  %v1779_v33 = vrot.slane %v1778_v39, 4 }
 0x49b   :  { %v1775_v9 = vadd.f32 %v1774_v44, %v1773_v42  ;;  %v1789_v27 = vadd.f32 %v1788_v34, %v1787_v60 }
 0x49c   :  { %v1841_v54 = vsel %vm1840_vm8, %v1832_v40, %v1839_v57  ;;  %v1766_v6 = vadd.f32 %v1765_v61, %v1764_v15  ;;  %v1780_v1 = vadd.f32 %v1779_v33, %v1778_v39 }
 0x49d   :  { %v1800_v62 = vmul.f32 0.0625, %v1775_v9  ;;  %v1843_v18 = vsel %vm1842_vm9, %v1833_v41, %v1841_v54  ;;  %v1790_v59 = vrot.slane %v1789_v27, 2 }
 0x49e   :  { %v1799_v3 = vmul.f32 0.0625, %v1766_v6  ;;  %v1781_v5 = vrot.slane %v1780_v1, 2 }
 0x49f   :  { %v1808_v25 = vpack.c.bf16 %v1800_v62, %v1800_v62  ;;  %v1791_v63 = vadd.f32 %v1790_v59, %v1789_v27 }
 0x4a0   :  { %v1807_v11 = vpack.c.bf16 %v1799_v3, %v1799_v3  ;;  %v1782_v0 = vadd.f32 %v1781_v5, %v1780_v1 }
 0x4a1   :  { %v1792_v49 = vrot.slane %v1791_v63, 1  ;;  %v1835_v21 = vunpack.c.l.b16 %v1808_v25 }
 0x4a2   :  { %v1834_v32 = vunpack.c.l.b16 %v1807_v11  ;;  %v1783_v45 = vrot.slane %v1782_v0, 1 }
 0x4a3   :  { %v1793_v50 = vadd.f32 %v1792_v49, %v1791_v63 }
 0x4a4   :  { %v1845_v37 = vsel %vm1844_vm10, %v1834_v32, %v1843_v18  ;;  %v1784_v57 = vadd.f32 %v1783_v45, %v1782_v0 }
 0x4a5   :  { %v1802_v36 = vmul.f32 0.0625, %v1793_v50  ;;  %v1847_v2 = vsel %vm1846_vm11, %v1835_v21, %v1845_v37 }
 0x4a6   :  { %v1801_v26 = vmul.f32 0.0625, %v1784_v57 }
 0x4a7   :  { %v1810_v10 = vpack.c.bf16 %v1802_v36, %v1802_v36 }
 0x4a8   :  { %v1809_v46 = vpack.c.bf16 %v1801_v26, %v1801_v26 }
 0x4a9   :  { %v1837_v56 = vunpack.c.l.b16 %v1810_v10 }
 0x4aa   :  { %v1836_v4 = vunpack.c.l.b16 %v1809_v46 }
 0x4ac   :  { %v1849_v48 = vsel %vm1848_vm12, %v1836_v4, %v1847_v2 }
 0x4ad   :  { %v1851_v43 = vsel %vm1850_vm13, %v1837_v56, %v1849_v48 }
 0x4ae   :  { %v1852_v20 = vpack.c.b16 %v1851_v43, %v1851_v43 }
 0x4b0   :  { %2192 = vmatmul.mubr.msk.bf16.vlgmr.msra.gmra.mrb[44].mxu1 %vm1584_vm0, %v1852_v20 }
 0x583   :  { %v1902_v53 = vpop.f32.mrb[44].mxu1 }
 0x584   :  { %v1903_v52 = vadd.f32 %v1995_v22, %v1902_v53  ;;  %v2193_v58 = vpop.f32.mrb[45].mxu1 }
 0x585   :  { %v1905_v31 = vpop.f32.mrb[46].mxu1 }
 0x586   :  { %1908 = vst [vmem:[#allocation10] sm:$0xff] %v1903_v52  ;;  %v2194_v23 = vpop.f32.mrb[47].mxu1 }
 0x587   :  { %2391 = shalt.err (!%p2388_p8)
}
 0x588   :  { %s2392_s7 = scalar_lea.hbm %s3129_s8, 128 }
 0x589   :  { %p2393_p9 = scmp.ne.s32.totalorder %s3129_s8, %s2392_s7  ;;  %p2396_p10 = scmp.lt.u32.totalorder %s2392_s7, %s3129_s8 }
 0x58b   :  { %p2398_p11 = pnand %p2396_p10, %p2393_p9 }
 0x58d   :  { %2401 = shalt.err (!%p2398_p11)
}
 0x58e   :  { %1918 = dma.vmem_to_hbm [thread:$0]  %s1916_s15, 128, %s3129_s8, [#allocation4]  }
 0x58f   :  { %2408 = dma.done.wait [#allocation4], 128  }
 0x590   :  { %2409 = vsyncadd [#allocation4], 4294967168 }
 0x591   :  { %1922 = vsyncpa [#allocation3], 1 }
 0x592   :  { %1923 = vsyncpa [#allocation6], 1 }
 0x593   :  { %1924 = vsyncpa [#allocation9], 1 }
 0x594   :  { %1925 = vsyncpa [#allocation4], 1 }

</bundles_post_ra>
